<compile_context>
chip_gen: v7x
topology: tpu7x:2x2x1
jax: 0.10.0
libtpu: 0.0.40
codegen_flags: <defaults>
</compile_context>

<pallas_src>
import functools

import jax
import jax.numpy as jnp
from jax.experimental import pallas as pl
from jax.experimental.pallas import tpu as pltpu

HIDDEN_DIM = 256


def _gelu_tanh(x):
    # tanh-form GELU: the transcendental lowers to the EUP slot (idle in this
    # kernel) instead of a long erf polynomial occupying the VALU slot.
    c0 = jnp.asarray(0.7978845608028654, x.dtype)   # sqrt(2/pi)
    c1 = jnp.asarray(0.044715, x.dtype)
    return 0.5 * x * (1.0 + jnp.tanh(c0 * x * (1.0 + c1 * x * x)))


def actor_kernel(x_ref, w1_ref, b1_ref, w2_ref, b2_ref, w3_ref, b3_ref,
                 w5_ref, b5_ref, o_ref):
    # Feature-major: activations are (H, tb), batch on the lane axis.
    x = x_ref[...].astype(jnp.bfloat16)                               # (IN, tb)

    # fc1 (+ GELU): bf16 MXU matmul, f32 accumulate, bf16 bias/GELU.
    h = jnp.dot(w1_ref[...], x, preferred_element_type=jnp.float32)   # (H, tb)
    h = _gelu_tanh(h.astype(jnp.bfloat16) + b1_ref[...])

    # fc2 (+ GELU)
    h = jnp.dot(w2_ref[...], h, preferred_element_type=jnp.float32)
    h = _gelu_tanh(h.astype(jnp.bfloat16) + b2_ref[...])

    # fc3 (+ GELU)
    h = jnp.dot(w3_ref[...], h, preferred_element_type=jnp.float32)
    h = _gelu_tanh(h.astype(jnp.bfloat16) + b3_ref[...])

    # fc5 (H -> 1): VPU multiply + sublane (XLU) reduction in f32 — yields a
    # lane-dense (1, tb) row, no N=1 MXU push and no masked column stores.
    logit = jnp.sum(h.astype(jnp.float32) * w5_ref[...], axis=0, keepdims=True)
    o_ref[...] = jnp.clip(logit + b5_ref[...], -2.0, 2.0)             # (1, tb)


def init_actor_params(state_dim, weight_dtype=jnp.bfloat16):
    """Deterministic params matching Actor._init_weights (all constants 0.01).

    Weights are kept in PyTorch (out_features, in_features) layout for the
    feature-major kernel; fc5's weight is stored as an (H, 1) column.
    """
    h = HIDDEN_DIM
    in_dim = state_dim + 3
    c = 0.01
    return {
        "w1": jnp.full((h, in_dim), c, weight_dtype),
        "b1": jnp.full((h, 1), c, weight_dtype),
        "w2": jnp.full((h, h), c, weight_dtype),
        "b2": jnp.full((h, 1), c, weight_dtype),
        "w3": jnp.full((h, h), c, weight_dtype),
        "b3": jnp.full((h, 1), c, weight_dtype),
        "w5": jnp.full((h, 1), c, jnp.float32),   # fc5 weight as a column (f32)
        "b5": jnp.full((1, 1), c, jnp.float32),
    }


def _round_up(x, m):
    return (x + m - 1) // m * m


@functools.partial(jax.jit, static_argnames=("batch_tile",))
def actor_forward(state, env_embed_3d, params, *, batch_tile=1024):
    """state: (B, state_dim) f32, env_embed_3d: (B, 3) f32 -> logit (B, 1) f32."""
    B, state_dim = state.shape
    H = HIDDEN_DIM
    in_dim = state_dim + 3

    # Batch maps to the lane axis -> tiles are multiples of 128 lanes.
    # Large batches use big tiles (amortize the ~0.35 us/step overhead);
    # small batches use a single rounded-up tile.
    tb = batch_tile if B >= batch_tile else _round_up(B, 128)
    b_pad = _round_up(B, tb)
    grid = (b_pad // tb,)

    # Pack (state, env_embed_3d) into one feature-major (in_dim, B) slab:
    # a single lane-dense input DMA per tile and one K=16 fc1 matmul.
    x = jnp.concatenate([state, env_embed_3d], axis=-1).T   # (in_dim, B)
    if b_pad != B:
        x = jnp.pad(x, ((0, 0), (0, b_pad - B)))

    # Weight/bias blocks always map to block (0, 0) -> DMA'd once, VMEM-resident.
    def resident(shape):
        return pl.BlockSpec(shape, lambda i: (0, 0))

    in_specs = [
        pl.BlockSpec((in_dim, tb), lambda i: (0, i)),   # packed input tile
        resident((H, in_dim)),                          # w1 (bf16)
        resident((H, 1)),                               # b1 (bf16)
        resident((H, H)),                               # w2 (bf16)
        resident((H, 1)),                               # b2 (bf16)
        resident((H, H)),                               # w3 (bf16)
        resident((H, 1)),                               # b3 (bf16)
        resident((H, 1)),                               # w5 (f32)
        resident((1, 1)),                               # b5 (f32)
    ]
    out_spec = pl.BlockSpec((1, tb), lambda i: (0, i))  # lane-dense output row

    wbytes = (H * in_dim + 2 * H * H + 3 * H) * 2 + (H + 1) * 4
    cost = pl.CostEstimate(
        flops=2 * b_pad * (in_dim * H + 2 * H * H + H),
        transcendentals=3 * b_pad * H,
        bytes_accessed=wbytes + b_pad * (in_dim + 1) * 4,
    )

    # TODO(synk): on v7x, verify that "parallel" actually shards the batch grid
    # across both TensorCores; switch to pltpu.CORE_PARALLEL / core_map if not.
    out = pl.pallas_call(
        actor_kernel,
        out_shape=jax.ShapeDtypeStruct((1, b_pad), jnp.float32),
        grid_spec=pltpu.PrefetchScalarGridSpec(
            num_scalar_prefetch=0,
            grid=grid,
            in_specs=in_specs,
            out_specs=out_spec,
        ),
        compiler_params=pltpu.CompilerParams(
            dimension_semantics=("parallel",),
        ),
        cost_estimate=cost,
    )(x, params["w1"], params["b1"], params["w2"], params["b2"],
      params["w3"], params["b3"], params["w5"], params["b5"])

    return out[0, :B][:, None]


def actor_forward_ref(state, env_embed_3d):
    """Pure-JAX f32 reference with exact PyTorch semantics (all params 0.01)."""
    c = 0.01
    H = HIDDEN_DIM
    in_dim = state.shape[1] + 3
    x = jnp.concatenate([state, env_embed_3d], axis=-1)
    w1 = jnp.full((in_dim, H), c, jnp.float32)
    w2 = jnp.full((H, H), c, jnp.float32)
    w3 = jnp.full((H, H), c, jnp.float32)
    w5 = jnp.full((H, 1), c, jnp.float32)
    b = jnp.full((H,), c, jnp.float32)
    b5 = jnp.full((1,), c, jnp.float32)
    h = jax.nn.gelu(x @ w1 + b, approximate=False)
    h = jax.nn.gelu(h @ w2 + b, approximate=False)
    h = jax.nn.gelu(h @ w3 + b, approximate=False)
    return jnp.clip(h @ w5 + b5, -2.0, 2.0)


if __name__ == "__main__":
    state_dim = 13          # -> input_dim = state_dim + 3 = 16
    batch = 8

    key = jax.random.PRNGKey(0)
    k1, k2, k3, k4 = jax.random.split(key, 4)
    state = jax.random.normal(k1, (batch, state_dim), dtype=jnp.float32)
    env_embed_3d = jax.random.normal(k2, (batch, 3), dtype=jnp.float32)

    params = init_actor_params(state_dim)

    # Small batch (single grid step, tile rounded up to 128 lanes).
    logit = jax.block_until_ready(actor_forward(state, env_embed_3d, params))
    ref = actor_forward_ref(state, env_embed_3d)
    assert logit.shape == (batch, 1)
    assert jnp.allclose(logit, ref, atol=8e-3, rtol=5e-2), (logit, ref)

    # Uneven batch with a small tile override -> exercises the multi-tile grid
    # (3 tiles of 128 lanes, padded) and the VMEM-resident weight path.
    big_b = 300
    state_b = jax.random.normal(k3, (big_b, state_dim), dtype=jnp.float32)
    env_b = jax.random.normal(k4, (big_b, 3), dtype=jnp.float32)
    logit_b = jax.block_until_ready(
        actor_forward(state_b, env_b, params, batch_tile=128))
    ref_b = actor_forward_ref(state_b, env_b)
    assert logit_b.shape == (big_b, 1)
    assert jnp.allclose(logit_b, ref_b, atol=8e-3, rtol=5e-2), (logit_b, ref_b)

    print("KERNEL_OK")
</pallas_src>

<mosaic_0001>
module attributes {stable_mosaic.version = 11 : i64} {
  func.func @actor_kernel(%arg0: i32, %arg1: memref<16x128xf32, #tpu.memory_space<vmem>>, %arg2: memref<256x16xbf16, #tpu.memory_space<vmem>>, %arg3: memref<256x1xbf16, #tpu.memory_space<vmem>>, %arg4: memref<256x256xbf16, #tpu.memory_space<vmem>>, %arg5: memref<256x1xbf16, #tpu.memory_space<vmem>>, %arg6: memref<256x256xbf16, #tpu.memory_space<vmem>>, %arg7: memref<256x1xbf16, #tpu.memory_space<vmem>>, %arg8: memref<256x1xf32, #tpu.memory_space<vmem>>, %arg9: memref<1x1xf32, #tpu.memory_space<vmem>>, %arg10: memref<1x128xf32, #tpu.memory_space<vmem>>) attributes {dimension_semantics = [#tpu.dimension_semantics<parallel>], iteration_bounds = array<i64: 1>, scalar_prefetch = 0 : i64, scratch_operands = 0 : i64, tpu.core_type = #tpu.core_type<tc>, window_params = [{transform_indices = @transform_0, window_bounds = array<i64: 16, 128>}, {pipeline_mode = #tpu.pipeline_mode<synchronous>, transform_indices = @transform_1, window_bounds = array<i64: 256, 16>}, {pipeline_mode = #tpu.pipeline_mode<synchronous>, transform_indices = @transform_2, window_bounds = array<i64: 256, 1>}, {pipeline_mode = #tpu.pipeline_mode<synchronous>, transform_indices = @transform_3, window_bounds = array<i64: 256, 256>}, {pipeline_mode = #tpu.pipeline_mode<synchronous>, transform_indices = @transform_4, window_bounds = array<i64: 256, 1>}, {pipeline_mode = #tpu.pipeline_mode<synchronous>, transform_indices = @transform_5, window_bounds = array<i64: 256, 256>}, {pipeline_mode = #tpu.pipeline_mode<synchronous>, transform_indices = @transform_6, window_bounds = array<i64: 256, 1>}, {pipeline_mode = #tpu.pipeline_mode<synchronous>, transform_indices = @transform_7, window_bounds = array<i64: 256, 1>}, {pipeline_mode = #tpu.pipeline_mode<synchronous>, transform_indices = @transform_8, window_bounds = array<i64: 1, 1>}, {transform_indices = @transform_9, window_bounds = array<i64: 1, 128>}]} {
    %c0 = arith.constant 0 : index
    %c0_0 = arith.constant 0 : index
    %0 = vector.load %arg1[%c0, %c0_0] : memref<16x128xf32, #tpu.memory_space<vmem>>, vector<16x128xf32>
    %1 = arith.truncf %0 : vector<16x128xf32> to vector<16x128xbf16>
    %c0_1 = arith.constant 0 : index
    %c0_2 = arith.constant 0 : index
    %2 = vector.load %arg2[%c0_1, %c0_2] : memref<256x16xbf16, #tpu.memory_space<vmem>>, vector<256x16xbf16>
    %cst = arith.constant dense<0.000000e+00> : vector<256x128xf32>
    %3 = tpu.matmul %2, %1, %cst {dimension_numbers = #tpu.dot_dimension_numbers<[1], [0], [0], [1], [0, 0, 1, 1], [], []>} : vector<256x16xbf16>, vector<16x128xbf16>, vector<256x128xf32> -> vector<256x128xf32>
    %4 = arith.truncf %3 : vector<256x128xf32> to vector<256x128xbf16>
    %c0_3 = arith.constant 0 : index
    %c0_4 = arith.constant 0 : index
    %5 = vector.load %arg3[%c0_3, %c0_4] : memref<256x1xbf16, #tpu.memory_space<vmem>>, vector<256x1xbf16>
    %6 = vector.broadcast %5 : vector<256x1xbf16> to vector<256x128xbf16>
    %7 = arith.addf %4, %6 : vector<256x128xbf16>
    %cst_5 = arith.constant 5.000000e-01 : bf16
    %8 = vector.broadcast %cst_5 : bf16 to vector<256x128xbf16>
    %9 = arith.mulf %8, %7 : vector<256x128xbf16>
    %cst_6 = arith.constant 7.968750e-01 : bf16
    %10 = vector.broadcast %cst_6 : bf16 to vector<256x128xbf16>
    %11 = arith.mulf %10, %7 : vector<256x128xbf16>
    %cst_7 = arith.constant 4.467770e-02 : bf16
    %12 = vector.broadcast %cst_7 : bf16 to vector<256x128xbf16>
    %13 = arith.mulf %12, %7 : vector<256x128xbf16>
    %14 = arith.mulf %13, %7 : vector<256x128xbf16>
    %cst_8 = arith.constant 1.000000e+00 : bf16
    %15 = vector.broadcast %cst_8 : bf16 to vector<256x128xbf16>
    %16 = arith.addf %15, %14 : vector<256x128xbf16>
    %17 = arith.mulf %11, %16 : vector<256x128xbf16>
    %18 = math.tanh %17 : vector<256x128xbf16>
    %cst_9 = arith.constant 1.000000e+00 : bf16
    %19 = vector.broadcast %cst_9 : bf16 to vector<256x128xbf16>
    %20 = arith.addf %19, %18 : vector<256x128xbf16>
    %21 = arith.mulf %9, %20 : vector<256x128xbf16>
    %c0_10 = arith.constant 0 : index
    %c0_11 = arith.constant 0 : index
    %22 = vector.load %arg4[%c0_10, %c0_11] : memref<256x256xbf16, #tpu.memory_space<vmem>>, vector<256x256xbf16>
    %cst_12 = arith.constant dense<0.000000e+00> : vector<256x128xf32>
    %23 = tpu.matmul %22, %21, %cst_12 {dimension_numbers = #tpu.dot_dimension_numbers<[1], [0], [0], [1], [0, 0, 1, 1], [], []>} : vector<256x256xbf16>, vector<256x128xbf16>, vector<256x128xf32> -> vector<256x128xf32>
    %24 = arith.truncf %23 : vector<256x128xf32> to vector<256x128xbf16>
    %c0_13 = arith.constant 0 : index
    %c0_14 = arith.constant 0 : index
    %25 = vector.load %arg5[%c0_13, %c0_14] : memref<256x1xbf16, #tpu.memory_space<vmem>>, vector<256x1xbf16>
    %26 = vector.broadcast %25 : vector<256x1xbf16> to vector<256x128xbf16>
    %27 = arith.addf %24, %26 : vector<256x128xbf16>
    %cst_15 = arith.constant 5.000000e-01 : bf16
    %28 = vector.broadcast %cst_15 : bf16 to vector<256x128xbf16>
    %29 = arith.mulf %28, %27 : vector<256x128xbf16>
    %cst_16 = arith.constant 7.968750e-01 : bf16
    %30 = vector.broadcast %cst_16 : bf16 to vector<256x128xbf16>
    %31 = arith.mulf %30, %27 : vector<256x128xbf16>
    %cst_17 = arith.constant 4.467770e-02 : bf16
    %32 = vector.broadcast %cst_17 : bf16 to vector<256x128xbf16>
    %33 = arith.mulf %32, %27 : vector<256x128xbf16>
    %34 = arith.mulf %33, %27 : vector<256x128xbf16>
    %cst_18 = arith.constant 1.000000e+00 : bf16
    %35 = vector.broadcast %cst_18 : bf16 to vector<256x128xbf16>
    %36 = arith.addf %35, %34 : vector<256x128xbf16>
    %37 = arith.mulf %31, %36 : vector<256x128xbf16>
    %38 = math.tanh %37 : vector<256x128xbf16>
    %cst_19 = arith.constant 1.000000e+00 : bf16
    %39 = vector.broadcast %cst_19 : bf16 to vector<256x128xbf16>
    %40 = arith.addf %39, %38 : vector<256x128xbf16>
    %41 = arith.mulf %29, %40 : vector<256x128xbf16>
    %c0_20 = arith.constant 0 : index
    %c0_21 = arith.constant 0 : index
    %42 = vector.load %arg6[%c0_20, %c0_21] : memref<256x256xbf16, #tpu.memory_space<vmem>>, vector<256x256xbf16>
    %cst_22 = arith.constant dense<0.000000e+00> : vector<256x128xf32>
    %43 = tpu.matmul %42, %41, %cst_22 {dimension_numbers = #tpu.dot_dimension_numbers<[1], [0], [0], [1], [0, 0, 1, 1], [], []>} : vector<256x256xbf16>, vector<256x128xbf16>, vector<256x128xf32> -> vector<256x128xf32>
    %44 = arith.truncf %43 : vector<256x128xf32> to vector<256x128xbf16>
    %c0_23 = arith.constant 0 : index
    %c0_24 = arith.constant 0 : index
    %45 = vector.load %arg7[%c0_23, %c0_24] : memref<256x1xbf16, #tpu.memory_space<vmem>>, vector<256x1xbf16>
    %46 = vector.broadcast %45 : vector<256x1xbf16> to vector<256x128xbf16>
    %47 = arith.addf %44, %46 : vector<256x128xbf16>
    %cst_25 = arith.constant 5.000000e-01 : bf16
    %48 = vector.broadcast %cst_25 : bf16 to vector<256x128xbf16>
    %49 = arith.mulf %48, %47 : vector<256x128xbf16>
    %cst_26 = arith.constant 7.968750e-01 : bf16
    %50 = vector.broadcast %cst_26 : bf16 to vector<256x128xbf16>
    %51 = arith.mulf %50, %47 : vector<256x128xbf16>
    %cst_27 = arith.constant 4.467770e-02 : bf16
    %52 = vector.broadcast %cst_27 : bf16 to vector<256x128xbf16>
    %53 = arith.mulf %52, %47 : vector<256x128xbf16>
    %54 = arith.mulf %53, %47 : vector<256x128xbf16>
    %cst_28 = arith.constant 1.000000e+00 : bf16
    %55 = vector.broadcast %cst_28 : bf16 to vector<256x128xbf16>
    %56 = arith.addf %55, %54 : vector<256x128xbf16>
    %57 = arith.mulf %51, %56 : vector<256x128xbf16>
    %58 = math.tanh %57 : vector<256x128xbf16>
    %cst_29 = arith.constant 1.000000e+00 : bf16
    %59 = vector.broadcast %cst_29 : bf16 to vector<256x128xbf16>
    %60 = arith.addf %59, %58 : vector<256x128xbf16>
    %61 = arith.mulf %49, %60 : vector<256x128xbf16>
    %62 = arith.extf %61 : vector<256x128xbf16> to vector<256x128xf32>
    %c0_30 = arith.constant 0 : index
    %c0_31 = arith.constant 0 : index
    %63 = vector.load %arg8[%c0_30, %c0_31] : memref<256x1xf32, #tpu.memory_space<vmem>>, vector<256x1xf32>
    %64 = vector.broadcast %63 : vector<256x1xf32> to vector<256x128xf32>
    %65 = arith.mulf %62, %64 : vector<256x128xf32>
    %cst_32 = arith.constant dense<0.000000e+00> : vector<128xf32>
    %66 = vector.multi_reduction <add>, %65, %cst_32 [0] : vector<256x128xf32> to vector<128xf32>
    %67 = vector.shape_cast %66 : vector<128xf32> to vector<1x128xf32>
    %c0_33 = arith.constant 0 : index
    %c0_34 = arith.constant 0 : index
    %68 = vector.load %arg9[%c0_33, %c0_34] : memref<1x1xf32, #tpu.memory_space<vmem>>, vector<1x1xf32>
    %69 = vector.broadcast %68 : vector<1x1xf32> to vector<1x128xf32>
    %70 = arith.addf %67, %69 : vector<1x128xf32>
    %cst_35 = arith.constant -2.000000e+00 : f32
    %cst_36 = arith.constant 2.000000e+00 : f32
    %71 = vector.broadcast %cst_35 : f32 to vector<1x128xf32>
    %72 = arith.maximumf %71, %70 : vector<1x128xf32>
    %73 = vector.broadcast %cst_36 : f32 to vector<1x128xf32>
    %74 = arith.minimumf %73, %72 : vector<1x128xf32>
    %c0_37 = arith.constant 0 : index
    %c0_38 = arith.constant 0 : index
    %75 = vector.load %arg10[%c0_37, %c0_38] : memref<1x128xf32, #tpu.memory_space<vmem>>, vector<1x128xf32>
    tpu.vector_store %arg10[%c0_37, %c0_38], %74 {strides = array<i32>} : memref<1x128xf32, #tpu.memory_space<vmem>>, vector<1x128xf32>,
    return
  }
  func.func @transform_0(%arg0: i32) -> (i32, i32) {
    %c0_i32 = arith.constant 0 : i32
    %c0_i32_0 = arith.constant 0 : i32
    return %c0_i32, %arg0 : i32, i32
  }
  func.func @transform_1(%arg0: i32) -> (i32, i32) {
    %c0_i32 = arith.constant 0 : i32
    %c0_i32_0 = arith.constant 0 : i32
    %c0_i32_1 = arith.constant 0 : i32
    return %c0_i32, %c0_i32_0 : i32, i32
  }
  func.func @transform_2(%arg0: i32) -> (i32, i32) {
    %c0_i32 = arith.constant 0 : i32
    %c0_i32_0 = arith.constant 0 : i32
    %c0_i32_1 = arith.constant 0 : i32
    return %c0_i32, %c0_i32_0 : i32, i32
  }
  func.func @transform_3(%arg0: i32) -> (i32, i32) {
    %c0_i32 = arith.constant 0 : i32
    %c0_i32_0 = arith.constant 0 : i32
    %c0_i32_1 = arith.constant 0 : i32
    return %c0_i32, %c0_i32_0 : i32, i32
  }
  func.func @transform_4(%arg0: i32) -> (i32, i32) {
    %c0_i32 = arith.constant 0 : i32
    %c0_i32_0 = arith.constant 0 : i32
    %c0_i32_1 = arith.constant 0 : i32
    return %c0_i32, %c0_i32_0 : i32, i32
  }
  func.func @transform_5(%arg0: i32) -> (i32, i32) {
    %c0_i32 = arith.constant 0 : i32
    %c0_i32_0 = arith.constant 0 : i32
    %c0_i32_1 = arith.constant 0 : i32
    return %c0_i32, %c0_i32_0 : i32, i32
  }
  func.func @transform_6(%arg0: i32) -> (i32, i32) {
    %c0_i32 = arith.constant 0 : i32
    %c0_i32_0 = arith.constant 0 : i32
    %c0_i32_1 = arith.constant 0 : i32
    return %c0_i32, %c0_i32_0 : i32, i32
  }
  func.func @transform_7(%arg0: i32) -> (i32, i32) {
    %c0_i32 = arith.constant 0 : i32
    %c0_i32_0 = arith.constant 0 : i32
    %c0_i32_1 = arith.constant 0 : i32
    return %c0_i32, %c0_i32_0 : i32, i32
  }
  func.func @transform_8(%arg0: i32) -> (i32, i32) {
    %c0_i32 = arith.constant 0 : i32
    %c0_i32_0 = arith.constant 0 : i32
    %c0_i32_1 = arith.constant 0 : i32
    return %c0_i32, %c0_i32_0 : i32, i32
  }
  func.func @transform_9(%arg0: i32) -> (i32, i32) {
    %c0_i32 = arith.constant 0 : i32
    %c0_i32_0 = arith.constant 0 : i32
    return %c0_i32, %arg0 : i32, i32
  }
}

</mosaic_0001>

<bundles_post_ra>
// kernel: actor_forward.1
= control target key start
LH: loop header
LB: loop body
LE: loop exit
PB: predicated region body
PF: predicated region fallthrough
CT: control target
= control target key end

     0   :  { %v4079_v0 = vmov 0   ;;  %vm154_vm0 = vcmask 130048   ;;  %s5477_s2 = inlined_call_operand.vmem [shape: bf16[256,1], index: 2, kind: input, shape index: {}]   ;;  %s5478_s0 = inlined_call_operand.vmem [shape: f32[16,128], index: 0, kind: input, shape index: {}]   ;;  %s5479_s1 = inlined_call_operand.vmem [shape: bf16[256,16], index: 1, kind: input, shape index: {}]   ;;  %s5480_s4 = inlined_call_operand.vmem [shape: bf16[256,1], index: 4, kind: input, shape index: {}]   ;;  %s5481_s6 = inlined_call_operand.vmem [shape: bf16[256,1], index: 6, kind: input, shape index: {}]   ;;  %s5482_s8 = inlined_call_operand.<no memory space> [shape: f32[1,1], index: 8, kind: input, shape index: {}]   ;;  %s5483_s3 = inlined_call_operand.vmem [shape: bf16[256,256], index: 3, kind: input, shape index: {}]   ;;  %s5484_s7 = inlined_call_operand.vmem [shape: f32[256,1], index: 7, kind: input, shape index: {}]   ;;  %s5485_s5 = inlined_call_operand.vmem [shape: bf16[256,256], index: 5, kind: input, shape index: {}]   ;;  %s5486_s9 = inlined_call_operand.vmem [shape: f32[1,128], index: 9, kind: output, shape index: {}]  }
   0x1   :  { %3870 = vset.pattern.permute.xlu1 %v4079_v0  ;;  %3869 = vset.pattern.permute.xlu0 %v4079_v0  ;;  %v396_v1 = vld [vmem:[%s5477_s2 + $0x40] sm:$0xf]  ;;  %v40_v4 = vld [vmem:[%s5478_s0 + $0x8] sm:$0xff]  ;;  %v397_v5 = vld [vmem:[%s5477_s2 + $0x44] sm:$0xf] }
   0x2   :  { %v380_v2 = vld [vmem:[%s5477_s2] sm:$0xf]  ;;  %606 = vperm.xlu0 %3869, %v396_v1   ;;  %v381_v6 = vld [vmem:[%s5477_s2 + $0x4] sm:$0xf]  ;;  %v3873_v10 = vld [vmem:[%s5479_s1 + $0x8] sm:$0xff]  }
   0x3   :  { %v39_v3 = vld [vmem:[%s5478_s0] sm:$0xff]  ;;  %414 = vperm.xlu1 %3870, %v380_v2   ;;  %v3874_v11 = vld [vmem:[%s5479_s1 + $0x48] sm:$0xff]   ;;  %v3875_v14 = vld [vmem:[%s5479_s1 + $0x10] sm:$0xff]  }
   0x4   :  { %v41_v7 = vpack.c.bf16 %v40_v4, %v39_v3  ;;  %v3871_v8 = vld [vmem:[%s5479_s1] sm:$0xff]   ;;  %v398_v12 = vld [vmem:[%s5477_s2 + $0x48] sm:$0xf]  ;;  %v399_v13 = vld [vmem:[%s5477_s2 + $0x4c] sm:$0xf] }
   0x5   :  { %v3872_v9 = vld [vmem:[%s5479_s1 + $0x40] sm:$0xff]   ;;  %3833 = vmatprep.mubr.msk.bf16.mxu0 %vm154_vm0, %v3871_v8  ;;  %v3876_v15 = vld [vmem:[%s5479_s1 + $0x50] sm:$0xff]   ;;  %v382_v16 = vld [vmem:[%s5477_s2 + $0x8] sm:$0xf] }
   0x6   :  { %3831 = vmatprep.subr.bf16.mxu0 %v41_v7  ;;  %3865 = vmatprep.subr.bf16.mxu1 %v41_v7  ;;  %v383_v17 = vld [vmem:[%s5477_s2 + $0xc] sm:$0xf]  ;;  %v3877_v18 = vld [vmem:[%s5479_s1 + $0x18] sm:$0xff]   ;;  %v400_v20 = vld [vmem:[%s5477_s2 + $0x50] sm:$0xf] }
   0x7   :  { %3832 = vmatpush3.bf16.msra.mxu0 %v41_v7  ;;  %3866 = vmatpush3.bf16.msra.mxu1 %v41_v7  ;;  %v3878_v19 = vld [vmem:[%s5479_s1 + $0x58] sm:$0xff]   ;;  %v3879_v21 = vld [vmem:[%s5479_s1 + $0x20] sm:$0xff]   ;;  %v401_v23 = vld [vmem:[%s5477_s2 + $0x54] sm:$0xf] }
   0x8   :  { %618 = vperm.xlu0 %3869, %v397_v5   ;;  %426 = vperm.xlu1 %3870, %v381_v6   ;;  %v3880_v22 = vld [vmem:[%s5479_s1 + $0x60] sm:$0xff]   ;;  %v384_v24 = vld [vmem:[%s5477_s2 + $0x10] sm:$0xf]  ;;  %v385_v25 = vld [vmem:[%s5477_s2 + $0x14] sm:$0xf] }
   0x9   :  { %3849 = vmatprep.mubr.msk.bf16.mxu1 %vm154_vm0, %v3872_v9  ;;  %v3881_v26 = vld [vmem:[%s5479_s1 + $0x28] sm:$0xff]   ;;  %v3883_v28 = vld [vmem:[%s5479_s1 + $0x30] sm:$0xff]   ;;  %v402_v30 = vld [vmem:[%s5477_s2 + $0x58] sm:$0xf] }
   0xa   :  { %3834 = vmatmul.mubr.msk.bf16.vlgmr.msra.gmra.mrb[0].mxu0 %vm154_vm0, %v3873_v10  ;;  %3850 = vmatmul.mubr.msk.bf16.vlgmr.msra.gmra.mrb[0].mxu1 %vm154_vm0, %v3874_v11  ;;  %v3882_v27 = vld [vmem:[%s5479_s1 + $0x68] sm:$0xff]   ;;  %v3884_v29 = vld [vmem:[%s5479_s1 + $0x70] sm:$0xff]   ;;  %v403_v31 = vld [vmem:[%s5477_s2 + $0x5c] sm:$0xf] }
   0xb   :  { %3837 = vmatprep.mubr.msk.bf16.mxu0 %vm154_vm0, %v3875_v14  ;;  %3853 = vmatprep.mubr.msk.bf16.mxu1 %vm154_vm0, %v3876_v15  ;;  %v386_v32 = vld [vmem:[%s5477_s2 + $0x18] sm:$0xf]  ;;  %v387_v33 = vld [vmem:[%s5477_s2 + $0x1c] sm:$0xf]  ;;  %v404_v36 = vld [vmem:[%s5477_s2 + $0x60] sm:$0xf] }
   0xc   :  { %630 = vperm.xlu0 %3869, %v398_v12   ;;  %642 = vperm.xlu1 %3870, %v399_v13   ;;  %v3885_v34 = vld [vmem:[%s5479_s1 + $0x38] sm:$0xff]   ;;  %v405_v37 = vld [vmem:[%s5477_s2 + $0x64] sm:$0xf]  ;;  %v388_v38 = vld [vmem:[%s5477_s2 + $0x20] sm:$0xf] }
   0xd   :  { %v3886_v35 = vld [vmem:[%s5479_s1 + $0x78] sm:$0xff]   ;;  %v389_v39 = vld [vmem:[%s5477_s2 + $0x24] sm:$0xf]  ;;  %v406_v40 = vld [vmem:[%s5477_s2 + $0x68] sm:$0xf] }
   0xe   :  { %v407_v41 = vld [vmem:[%s5477_s2 + $0x6c] sm:$0xf]  ;;  %v390_v42 = vld [vmem:[%s5477_s2 + $0x28] sm:$0xf]  ;;  %v408_v44 = vld [vmem:[%s5477_s2 + $0x70] sm:$0xf] }
   0xf   :  { %v391_v43 = vld [vmem:[%s5477_s2 + $0x2c] sm:$0xf]  ;;  %v409_v45 = vld [vmem:[%s5477_s2 + $0x74] sm:$0xf]  ;;  %v392_v46 = vld [vmem:[%s5477_s2 + $0x30] sm:$0xf] }
  0x10   :  { %438 = vperm.xlu0 %3869, %v382_v16   ;;  %450 = vperm.xlu1 %3870, %v383_v17   ;;  %v393_v47 = vld [vmem:[%s5477_s2 + $0x34] sm:$0xf]  ;;  %v410_v48 = vld [vmem:[%s5477_s2 + $0x78] sm:$0xf]  ;;  %v411_v49 = vld [vmem:[%s5477_s2 + $0x7c] sm:$0xf] }
  0x11   :  { %v394_v50 = vld [vmem:[%s5477_s2 + $0x38] sm:$0xf]  ;;  %v395_v51 = vld [vmem:[%s5477_s2 + $0x3c] sm:$0xf]  ;;  %v1437_v52 = vld [vmem:[%s5480_s4 + $0x40] sm:$0xf] }
  0x12   :  { %3838 = vmatmul.mubr.msk.bf16.gmra.mrb[4].mxu0 %vm154_vm0, %v3877_v18  ;;  %3854 = vmatmul.mubr.msk.bf16.gmra.mrb[4].mxu1 %vm154_vm0, %v3878_v19  ;;  %v1438_v53 = vld [vmem:[%s5480_s4 + $0x44] sm:$0xf]  ;;  %v1421_v54 = vld [vmem:[%s5480_s4] sm:$0xf]  ;;  %v1439_v56 = vld [vmem:[%s5480_s4 + $0x48] sm:$0xf] }
  0x13   :  { %3841 = vmatprep.mubr.msk.bf16.mxu0 %vm154_vm0, %v3879_v21  ;;  %3857 = vmatprep.mubr.msk.bf16.mxu1 %vm154_vm0, %v3880_v22  ;;  %v1422_v55 = vld [vmem:[%s5480_s4 + $0x4] sm:$0xf]  ;;  %v1440_v57 = vld [vmem:[%s5480_s4 + $0x4c] sm:$0xf]  ;;  %v1423_v58 = vld [vmem:[%s5480_s4 + $0x8] sm:$0xf] }
  0x14   :  { %654 = vperm.xlu0 %3869, %v400_v20   ;;  %666 = vperm.xlu1 %3870, %v401_v23   ;;  %v1424_v59 = vld [vmem:[%s5480_s4 + $0xc] sm:$0xf]  ;;  %v1441_v60 = vld [vmem:[%s5480_s4 + $0x50] sm:$0xf]  ;;  %v1442_v61 = vld [vmem:[%s5480_s4 + $0x54] sm:$0xf] }
  0x15   :  { %v1425_v62 = vld [vmem:[%s5480_s4 + $0x10] sm:$0xf]  ;;  %v1426_v63 = vld [vmem:[%s5480_s4 + $0x14] sm:$0xf]  ;;  %v1443_v0 = vld [vmem:[%s5480_s4 + $0x58] sm:$0xf] }
  0x16   :  { %v1444_v1 = vld [vmem:[%s5480_s4 + $0x5c] sm:$0xf]  ;;  %v1427_v2 = vld [vmem:[%s5480_s4 + $0x18] sm:$0xf]  ;;  %v1445_v4 = vld [vmem:[%s5480_s4 + $0x60] sm:$0xf] }
  0x17   :  { %v1428_v3 = vld [vmem:[%s5480_s4 + $0x1c] sm:$0xf]  ;;  %v1446_v5 = vld [vmem:[%s5480_s4 + $0x64] sm:$0xf]  ;;  %v1429_v6 = vld [vmem:[%s5480_s4 + $0x20] sm:$0xf] }
  0x18   :  { %462 = vperm.xlu0 %3869, %v384_v24   ;;  %474 = vperm.xlu1 %3870, %v385_v25   ;;  %v1430_v7 = vld [vmem:[%s5480_s4 + $0x24] sm:$0xf]  ;;  %v1447_v8 = vld [vmem:[%s5480_s4 + $0x68] sm:$0xf]  ;;  %v1448_v9 = vld [vmem:[%s5480_s4 + $0x6c] sm:$0xf] }
  0x19   :  { %v1431_v10 = vld [vmem:[%s5480_s4 + $0x28] sm:$0xf]  ;;  %v1432_v11 = vld [vmem:[%s5480_s4 + $0x2c] sm:$0xf]  ;;  %v1449_v12 = vld [vmem:[%s5480_s4 + $0x70] sm:$0xf] }
  0x1a   :  { %3842 = vmatmul.mubr.msk.bf16.gmra.mrb[8].mxu0 %vm154_vm0, %v3881_v26  ;;  %3858 = vmatmul.mubr.msk.bf16.gmra.mrb[8].mxu1 %vm154_vm0, %v3882_v27  ;;  %v1450_v13 = vld [vmem:[%s5480_s4 + $0x74] sm:$0xf]  ;;  %v1433_v14 = vld [vmem:[%s5480_s4 + $0x30] sm:$0xf]  ;;  %v1451_v16 = vld [vmem:[%s5480_s4 + $0x78] sm:$0xf]  ;;  %v14_v26 = vstv %s5482_s8 }
  0x1b   :  { %3845 = vmatprep.mubr.msk.bf16.mxu0 %vm154_vm0, %v3883_v28  ;;  %3861 = vmatprep.mubr.msk.bf16.mxu1 %vm154_vm0, %v3884_v29  ;;  %v1434_v15 = vld [vmem:[%s5480_s4 + $0x34] sm:$0xf]  ;;  %v1452_v17 = vld [vmem:[%s5480_s4 + $0x7c] sm:$0xf]  ;;  %v1435_v18 = vld [vmem:[%s5480_s4 + $0x38] sm:$0xf] }
  0x1c   :  { %678 = vperm.xlu0 %3869, %v402_v30   ;;  %690 = vperm.xlu1 %3870, %v403_v31   ;;  %v1436_v19 = vld [vmem:[%s5480_s4 + $0x3c] sm:$0xf]  ;;  %v2462_v20 = vld [vmem:[%s5481_s6] sm:$0xf]  ;;  %v2463_v21 = vld [vmem:[%s5481_s6 + $0x4] sm:$0xf] }
  0x1d   :  { %v2464_v22 = vld [vmem:[%s5481_s6 + $0x8] sm:$0xf]  ;;  %v2465_v23 = vld [vmem:[%s5481_s6 + $0xc] sm:$0xf]  ;;  %v2466_v24 = vld [vmem:[%s5481_s6 + $0x10] sm:$0xf] }
  0x1e   :  { %v2467_v25 = vld [vmem:[%s5481_s6 + $0x14] sm:$0xf]  ;;  %15 = vst [vmem:[#allocation2] sm:$0x1] %v14_v26  ;;  %v2468_v27 = vld [vmem:[%s5481_s6 + $0x18] sm:$0xf] }
  0x1f   :  { %v2469_v28 = vld [vmem:[%s5481_s6 + $0x1c] sm:$0xf]  ;;  %v2470_v29 = vld [vmem:[%s5481_s6 + $0x20] sm:$0xf]  ;;  %v2471_v30 = vld [vmem:[%s5481_s6 + $0x24] sm:$0xf] }
  0x20   :  { %486 = vperm.xlu0 %3869, %v386_v32   ;;  %498 = vperm.xlu1 %3870, %v387_v33   ;;  %v2472_v31 = vld [vmem:[%s5481_s6 + $0x28] sm:$0xf]  ;;  %v2473_v32 = vld [vmem:[%s5481_s6 + $0x2c] sm:$0xf]  ;;  %v2474_v33 = vld [vmem:[%s5481_s6 + $0x30] sm:$0xf] }
  0x21   :  { %v3179_v26 = vld [vmem:[%s5484_s7 + $0x68] sm:$0xff] }
  0x22   :  { %3846 = vmatmul.mubr.msk.bf16.gmra.mrb[12].mxu0 %vm154_vm0, %v3885_v34  ;;  %3862 = vmatmul.mubr.msk.bf16.gmra.mrb[12].mxu1 %vm154_vm0, %v3886_v35  ;;  %v2475_v34 = vld [vmem:[%s5481_s6 + $0x34] sm:$0xf] }
  0x24   :  { %702 = vperm.xlu0 %3869, %v404_v36   ;;  %714 = vperm.xlu1 %3870, %v405_v37   ;;  %v2476_v37 = vld [vmem:[%s5481_s6 + $0x38] sm:$0xf] }
  0x28   :  { %510 = vperm.xlu0 %3869, %v388_v38   ;;  %522 = vperm.xlu1 %3870, %v389_v39   ;;  %v2477_v38 = vld [vmem:[%s5481_s6 + $0x3c] sm:$0xf] }
  0x2c   :  { %726 = vperm.xlu0 %3869, %v406_v40   ;;  %738 = vperm.xlu1 %3870, %v407_v41   ;;  %v2478_v41 = vld [vmem:[%s5481_s6 + $0x40] sm:$0xf] }
  0x30   :  { %534 = vperm.xlu0 %3869, %v390_v42   ;;  %546 = vperm.xlu1 %3870, %v391_v43   ;;  %v2479_v42 = vld [vmem:[%s5481_s6 + $0x44] sm:$0xf]  ;;  %v2480_v43 = vld [vmem:[%s5481_s6 + $0x48] sm:$0xf] }
  0x34   :  { %750 = vperm.xlu0 %3869, %v408_v44   ;;  %762 = vperm.xlu1 %3870, %v409_v45   ;;  %v2481_v44 = vld [vmem:[%s5481_s6 + $0x4c] sm:$0xf] }
  0x38   :  { %558 = vperm.xlu0 %3869, %v392_v46   ;;  %570 = vperm.xlu1 %3870, %v393_v47   ;;  %v2482_v47 = vld [vmem:[%s5481_s6 + $0x50] sm:$0xf] }
  0x3c   :  { %774 = vperm.xlu0 %3869, %v410_v48   ;;  %786 = vperm.xlu1 %3870, %v411_v49   ;;  %v2483_v48 = vld [vmem:[%s5481_s6 + $0x54] sm:$0xf] }
  0x40   :  { %582 = vperm.xlu0 %3869, %v394_v50   ;;  %594 = vperm.xlu1 %3870, %v395_v51   ;;  %v2484_v51 = vld [vmem:[%s5481_s6 + $0x58] sm:$0xf] }
  0x44   :  { %1647 = vperm.xlu0 %3869, %v1437_v52   ;;  %1659 = vperm.xlu1 %3870, %v1438_v53   ;;  %v2485_v52 = vld [vmem:[%s5481_s6 + $0x5c] sm:$0xf]  ;;  %v3889_v53 = vld [vmem:[%s5483_s3 + $0x4] ss:$8 sps:$4 sm:$0xff]  }
  0x45   :  { %1276 = vmatprep.mubr.bf16.mxu1 %v3889_v53 }
  0x48   :  { %1455 = vperm.xlu0 %3869, %v1421_v54   ;;  %1467 = vperm.xlu1 %3870, %v1422_v55   ;;  %v2486_v54 = vld [vmem:[%s5481_s6 + $0x60] sm:$0xf]  ;;  %v2487_v55 = vld [vmem:[%s5481_s6 + $0x64] sm:$0xf] }
  0x4c   :  { %1671 = vperm.xlu0 %3869, %v1439_v56   ;;  %1683 = vperm.xlu1 %3870, %v1440_v57  }
  0x50   :  { %1479 = vperm.xlu0 %3869, %v1423_v58   ;;  %1491 = vperm.xlu1 %3870, %v1424_v59   ;;  %v2488_v58 = vld [vmem:[%s5481_s6 + $0x68] sm:$0xf]  ;;  %v2489_v59 = vld [vmem:[%s5481_s6 + $0x6c] sm:$0xf] }
  0x54   :  { %1695 = vperm.xlu0 %3869, %v1441_v60   ;;  %1707 = vperm.xlu1 %3870, %v1442_v61  }
  0x58   :  { %1503 = vperm.xlu0 %3869, %v1425_v62   ;;  %1515 = vperm.xlu1 %3870, %v1426_v63   ;;  %v2490_v62 = vld [vmem:[%s5481_s6 + $0x70] sm:$0xf]  ;;  %v3166_v63 = vld [vmem:[%s5484_s7] sm:$0xff] }
  0x5c   :  { %1719 = vperm.xlu0 %3869, %v1443_v0   ;;  %1731 = vperm.xlu1 %3870, %v1444_v1   ;;  %v3167_v0 = vld [vmem:[%s5484_s7 + $0x8] sm:$0xff]  ;;  %v3168_v1 = vld [vmem:[%s5484_s7 + $0x10] sm:$0xff] }
  0x60   :  { %1527 = vperm.xlu0 %3869, %v1427_v2   ;;  %1539 = vperm.xlu1 %3870, %v1428_v3  }
  0x64   :  { %1743 = vperm.xlu0 %3869, %v1445_v4   ;;  %1755 = vperm.xlu1 %3870, %v1446_v5   ;;  %v3169_v4 = vld [vmem:[%s5484_s7 + $0x18] sm:$0xff]  ;;  %v3170_v5 = vld [vmem:[%s5484_s7 + $0x20] sm:$0xff] }
  0x68   :  { %1551 = vperm.xlu0 %3869, %v1429_v6   ;;  %1563 = vperm.xlu1 %3870, %v1430_v7  }
  0x6c   :  { %1767 = vperm.xlu0 %3869, %v1447_v8   ;;  %1779 = vperm.xlu1 %3870, %v1448_v9   ;;  %v3171_v8 = vld [vmem:[%s5484_s7 + $0x28] sm:$0xff]  ;;  %v3172_v9 = vld [vmem:[%s5484_s7 + $0x30] sm:$0xff] }
  0x70   :  { %1575 = vperm.xlu0 %3869, %v1431_v10   ;;  %1587 = vperm.xlu1 %3870, %v1432_v11   ;;  %v3173_v10 = vld [vmem:[%s5484_s7 + $0x38] sm:$0xff]  ;;  %v3174_v11 = vld [vmem:[%s5484_s7 + $0x40] sm:$0xff] }
  0x74   :  { %1791 = vperm.xlu0 %3869, %v1449_v12   ;;  %1803 = vperm.xlu1 %3870, %v1450_v13  }
  0x78   :  { %1599 = vperm.xlu0 %3869, %v1433_v14   ;;  %1611 = vperm.xlu1 %3870, %v1434_v15   ;;  %v3175_v14 = vld [vmem:[%s5484_s7 + $0x48] sm:$0xff]  ;;  %v3176_v15 = vld [vmem:[%s5484_s7 + $0x50] sm:$0xff] }
  0x7c   :  { %1815 = vperm.xlu0 %3869, %v1451_v16   ;;  %1827 = vperm.xlu1 %3870, %v1452_v17  }
  0x80   :  { %1623 = vperm.xlu0 %3869, %v1435_v18   ;;  %1635 = vperm.xlu1 %3870, %v1436_v19   ;;  %v4080_v18 = vmov 839922192  }
  0x81   :  { %v4438_v35 = vpop.permute.xlu0 %606  ;;  %v418_v19 = vunpack.c.l.s4 %v4080_v18  ;;  %v3184_v18 = vld [vmem:[%s5484_s7 + $0x90] sm:$0xff] }
  0x82   :  { %v4440_v36 = vpop.permute.xlu1 %414 }
  0x84   :  { %2496 = vperm.xlu0 %3869, %v2462_v20   ;;  %2508 = vperm.xlu1 %3870, %v2463_v21   ;;  %v420_v20 = vlaneseq  ;;  %v3177_v21 = vld [vmem:[%s5484_s7 + $0x58] sm:$0xff] }
  0x87   :  { %v4448_v39 = vpop.permute.xlu0 %618  ;;  %v4450_v40 = vpop.permute.xlu1 %426 }
  0x88   :  { %2520 = vperm.xlu0 %3869, %v2464_v22   ;;  %2532 = vperm.xlu1 %3870, %v2465_v23   ;;  %v2491_v22 = vld [vmem:[%s5481_s6 + $0x74] sm:$0xf]  ;;  %v419_v23 = vunpack.c.0.s8 %v418_v19 }
  0x8b   :  { %v4464_v45 = vpop.permute.xlu0 %630  ;;  %v4466_v46 = vpop.permute.xlu1 %642 }
  0x8c   :  { %2544 = vperm.xlu0 %3869, %v2466_v24   ;;  %2556 = vperm.xlu1 %3870, %v2467_v25   ;;  %v4565_v24 = vshrl.u32 %v420_v20, 7  ;;  %v3178_v25 = vld [vmem:[%s5484_s7 + $0x60] sm:$0xff] }
  0x8f   :  { %v4474_v49 = vpop.permute.xlu0 %438  ;;  %v4476_v50 = vpop.permute.xlu1 %450 }
  0x90   :  { %2568 = vperm.xlu0 %3869, %v2468_v27   ;;  %2580 = vperm.xlu1 %3870, %v2469_v28  }
  0x93   :  { %v4493_v56 = vpop.permute.xlu0 %654  ;;  %v4495_v57 = vpop.permute.xlu1 %666 }
  0x94   :  { %2592 = vperm.xlu0 %3869, %v2470_v29   ;;  %2604 = vperm.xlu1 %3870, %v2471_v30   ;;  %v4578_v29 = vsub.s32 %v419_v23, %v4565_v24  ;;  %v2492_v30 = vld [vmem:[%s5481_s6 + $0x78] sm:$0xf] }
  0x97   :  { %v4503_v60 = vpop.permute.xlu0 %462  ;;  %v4505_v61 = vpop.permute.xlu1 %474 }
  0x98   :  { %2616 = vperm.xlu0 %3869, %v2472_v31   ;;  %2628 = vperm.xlu1 %3870, %v2473_v32   ;;  %v2493_v31 = vld [vmem:[%s5481_s6 + $0x7c] sm:$0xf]  ;;  %v471_v19 = vrot.slane %v4503_v60, %v4578_v29  ;;  %v483_v20 = vrot.slane %v4505_v61, %v4578_v29 }
  0x9b   :  { %v4519_v2 = vpop.permute.xlu0 %678  ;;  %v4521_v3 = vpop.permute.xlu1 %690 }
  0x9c   :  { %2640 = vperm.xlu0 %3869, %v2474_v33   ;;  %2652 = vperm.xlu1 %3870, %v2475_v34   ;;  %v639_v34 = vrot.slane %v4464_v45, %v4578_v29  ;;  %v615_v45 = vrot.slane %v4438_v35, %v4578_v29  ;;  %v687_v60 = vrot.slane %v4519_v2, %v4578_v29 }
  0x9d   :  { %v699_v61 = vrot.slane %v4521_v3, %v4578_v29  ;;  %v3186_v3 = vld [vmem:[%s5484_s7 + $0xa0] sm:$0xff] }
  0x9f   :  { %v4529_v6 = vpop.permute.xlu0 %486  ;;  %v4531_v7 = vpop.permute.xlu1 %498 }
  0xa0   :  { %2664 = vperm.xlu0 %3869, %v2476_v37   ;;  %2676 = vperm.xlu1 %3870, %v2477_v38   ;;  %v651_v37 = vrot.slane %v4466_v46, %v4578_v29  ;;  %v447_v38 = vrot.slane %v4474_v49, %v4578_v29  ;;  %v423_v46 = vrot.slane %v4440_v36, %v4578_v29  ;;  %v3182_v36 = vld [vmem:[%s5484_s7 + $0x80] sm:$0xff] }
  0xa1   :  { %v435_v49 = vrot.slane %v4450_v40, %v4578_v29 }
  0xa3   :  { %v4545_v12 = vpop.permute.xlu0 %702  ;;  %v4547_v13 = vpop.permute.xlu1 %714 }
  0xa4   :  { %2688 = vperm.xlu0 %3869, %v2478_v41   ;;  %2700 = vperm.xlu1 %3870, %v2479_v42   ;;  %v459_v41 = vrot.slane %v4476_v50, %v4578_v29 }
  0xa7   :  { %v4555_v16 = vpop.permute.xlu0 %510  ;;  %v4557_v17 = vpop.permute.xlu1 %522 }
  0xa8   :  { %2712 = vperm.xlu0 %3869, %v2480_v43   ;;  %2724 = vperm.xlu1 %3870, %v2481_v44   ;;  %v3180_v44 = vld [vmem:[%s5484_s7 + $0x70] sm:$0xff] }
  0xab   :  { %v4573_v27 = vpop.permute.xlu0 %726  ;;  %v4575_v28 = vpop.permute.xlu1 %738 }
  0xac   :  { %2736 = vperm.xlu0 %3869, %v2482_v47   ;;  %2748 = vperm.xlu1 %3870, %v2483_v48   ;;  %v3181_v47 = vld [vmem:[%s5484_s7 + $0x78] sm:$0xff]  ;;  %v627_v48 = vrot.slane %v4448_v39, %v4578_v29 }
  0xae   :  { %v3485_v39 = vcombine.low %v615_v45, %v627_v48 }
  0xaf   :  { %v4586_v32 = vpop.permute.xlu0 %534  ;;  %v4588_v33 = vpop.permute.xlu1 %546 }
  0xb0   :  { %2760 = vperm.xlu0 %3869, %v2484_v51   ;;  %2772 = vperm.xlu1 %3870, %v2485_v52  }
  0xb4   :  { %2784 = vperm.xlu0 %3869, %v2486_v54   ;;  %2796 = vperm.xlu1 %3870, %v2487_v55   ;;  %v3486_v54 = vcombine.low %v639_v34, %v651_v37  ;;  %v3478_v55 = vcombine.low %v447_v38, %v459_v41  ;;  %v495_v37 = vrot.slane %v4529_v6, %v4578_v29 }
  0xb5   :  { %v507_v38 = vrot.slane %v4531_v7, %v4578_v29  ;;  %v3187_v7 = vld [vmem:[%s5484_s7 + $0xa8] sm:$0xff] }
  0xb8   :  { %2808 = vperm.xlu0 %3869, %v2488_v58   ;;  %2820 = vperm.xlu1 %3870, %v2489_v59  }
  0xbc   :  { %2832 = vperm.xlu0 %3869, %v2490_v62   ;;  %3200 = vperm.xlu1 %3870, %v3166_v63   ;;  %v3477_v63 = vcombine.low %v423_v46, %v435_v49 }
  0xc0   :  { %3205 = vperm.xlu0 %3869, %v3167_v0   ;;  %3210 = vperm.xlu1 %3870, %v3168_v1   ;;  %v3183_v1 = vld [vmem:[%s5484_s7 + $0x88] sm:$0xff] }
  0xc4   :  { %3215 = vperm.xlu0 %3869, %v3169_v4   ;;  %3220 = vperm.xlu1 %3870, %v3170_v5   ;;  %v4618_v4 = vpop.permute.xlu0 %750  ;;  %v4620_v5 = vpop.permute.xlu1 %762 }
  0xc8   :  { %3225 = vperm.xlu0 %3869, %v3171_v8   ;;  %3230 = vperm.xlu1 %3870, %v3172_v9   ;;  %v4661_v41 = vpop.permute.xlu0 %558 }
  0xcc   :  { %3235 = vperm.xlu0 %3869, %v3173_v10   ;;  %3240 = vperm.xlu1 %3870, %v3174_v11  }
  0xd0   :  { %3245 = vperm.xlu0 %3869, %v3175_v14   ;;  %3250 = vperm.xlu1 %3870, %v3176_v15   ;;  %v663_v14 = vrot.slane %v4493_v56, %v4578_v29  ;;  %v675_v15 = vrot.slane %v4495_v57, %v4578_v29  ;;  %v3185_v56 = vld [vmem:[%s5484_s7 + $0x98] sm:$0xff] }
  0xd4   :  { %3255 = vperm.xlu0 %3869, %v3177_v21   ;;  %2844 = vperm.xlu1 %3870, %v2491_v22  }
  0xd8   :  { %3260 = vperm.xlu0 %3869, %v3178_v25   ;;  %3265 = vperm.xlu1 %3870, %v3179_v26  }
  0xdc   :  { %2856 = vperm.xlu0 %3869, %v2492_v30   ;;  %2868 = vperm.xlu1 %3870, %v2493_v31  }
  0xdd   :  { %v3835_v42 = vpop.f32.mrb[0].mxu0  ;;  %v3851_v43 = vpop.f32.mrb[0].mxu1 }
  0xde   :  { %v237_v50 = vpop.f32.mrb[1].mxu0  ;;  %v301_v51 = vpop.f32.mrb[1].mxu1 }
  0xdf   :  { %v3836_v52 = vpop.f32.mrb[2].mxu0  ;;  %v3852_v53 = vpop.f32.mrb[2].mxu1 }
  0xe0   :  { %3270 = vperm.xlu0 %3869, %v3180_v44   ;;  %3275 = vperm.xlu1 %3870, %v3181_v47   ;;  %v365_v58 = vpack.c.bf16 %v3836_v52, %v3835_v42  ;;  %v373_v59 = vpack.c.bf16 %v3852_v53, %v3851_v43  ;;  %v240_v35 = vpop.f32.mrb[3].mxu0  ;;  %v304_v62 = vpop.f32.mrb[3].mxu1  ;;  %v3487_v43 = vcombine.low %v663_v14, %v675_v15  ;;  %v3189_v14 = vld [vmem:[%s5484_s7 + $0xb8] sm:$0xff] }
  0xe1   :  { %v364_v0 = vpack.c.bf16 %v240_v35, %v237_v50  ;;  %v372_v40 = vpack.c.bf16 %v304_v62, %v301_v51  ;;  %v4663_v42 = vpop.permute.xlu1 %570  ;;  %v4669_v44 = vcombine.low %v471_v19, %v483_v20  ;;  %v3488_v53 = vcombine.low %v687_v60, %v699_v61 }
  0xe2   :  { %v4622_v8 = vadd.bf16 %v3478_v55, %v365_v58  ;;  %v4624_v9 = vadd.bf16 %v3486_v54, %v373_v59  ;;  %v3480_v59 = vcombine.low %v495_v37, %v507_v38  ;;  %v711_v35 = vrot.slane %v4545_v12, %v4578_v29 }
  0xe3   :  { %v4626_v10 = vadd.bf16 %v3477_v63, %v364_v0  ;;  %v4628_v11 = vadd.bf16 %v3485_v39, %v372_v40  ;;  %v723_v62 = vrot.slane %v4547_v13, %v4578_v29  ;;  %v3188_v39 = vld [vmem:[%s5484_s7 + $0xb0] sm:$0xff]  ;;  %v519_v63 = vrot.slane %v4555_v16, %v4578_v29 }
  0xe4   :  { %3280 = vperm.xlu0 %3869, %v3182_v36   ;;  %3285 = vperm.xlu1 %3870, %v3183_v1   ;;  %v941_v21 = vmul.bf16 1027030327, %v4622_v8  ;;  %v949_v57 = vmul.bf16 1027030327, %v4624_v9  ;;  %v531_v0 = vrot.slane %v4557_v17, %v4578_v29  ;;  %v735_v40 = vrot.slane %v4573_v27, %v4578_v29 }
  0xe5   :  { %v940_v22 = vmul.bf16 1027030327, %v4626_v10  ;;  %v948_v23 = vmul.bf16 1027030327, %v4628_v11  ;;  %v3839_v25 = vpop.f32.mrb[4].mxu0  ;;  %v4648_v26 = vpop.f32.mrb[4].mxu1  ;;  %v747_v15 = vrot.slane %v4575_v28, %v4578_v29  ;;  %v543_v17 = vrot.slane %v4586_v32, %v4578_v29 }
  0xe6   :  { %v4655_v31 = vpop.f32.mrb[5].mxu0  ;;  %v317_v34 = vpop.f32.mrb[5].mxu1  ;;  %v957_v47 = vmul.bf16 %v941_v21, %v4622_v8  ;;  %v965_v46 = vmul.bf16 %v949_v57, %v4624_v9  ;;  %v932_v36 = vmul.bf16 1061961548, %v4628_v11  ;;  %v924_v12 = vmul.bf16 1061961548, %v4626_v10 }
  0xe7   :  { %v956_v30 = vmul.bf16 %v940_v22, %v4626_v10  ;;  %v964_v2 = vmul.bf16 %v948_v23, %v4628_v11  ;;  %v3840_v6 = vpop.f32.mrb[6].mxu0  ;;  %v3856_v45 = vpop.f32.mrb[6].mxu1  ;;  %v555_v27 = vrot.slane %v4588_v33, %v4578_v29  ;;  %v759_v20 = vrot.slane %v4618_v4, %v4578_v29  ;;  %v3190_v28 = vld [vmem:[%s5484_s7 + $0xc0] sm:$0xff] }
  0xe8   :  { %3290 = vperm.xlu0 %3869, %v3184_v18   ;;  %3295 = vperm.xlu1 %3870, %v3185_v56   ;;  %v367_v49 = vpack.c.bf16 %v3840_v6, %v3839_v25  ;;  %v375_v50 = vpack.c.bf16 %v3856_v45, %v4648_v26  ;;  %v256_v51 = vpop.f32.mrb[7].mxu0  ;;  %v320_v52 = vpop.f32.mrb[7].mxu1  ;;  %v973_v16 = vadd.bf16 1065369472, %v957_v47  ;;  %v981_v18 = vadd.bf16 1065369472, %v965_v46 }
  0xe9   :  { %v980_v48 = vadd.bf16 1065369472, %v964_v2  ;;  %v972_v54 = vadd.bf16 1065369472, %v956_v30  ;;  %v366_v55 = vpack.c.bf16 %v256_v51, %v4655_v31  ;;  %v374_v58 = vpack.c.bf16 %v320_v52, %v317_v34  ;;  %v775_v21 = vpop.permute.xlu0 %774  ;;  %v787_v22 = vpop.permute.xlu1 %786 }
  0xea   :  { %v771_v57 = vrot.slane %v4620_v5, %v4578_v29  ;;  %v925_v23 = vmul.bf16 1061961548, %v4622_v8  ;;  %v933_v32 = vmul.bf16 1061961548, %v4624_v9  ;;  %v4715_v25 = vadd.bf16 %v3480_v59, %v367_v49  ;;  %v3191_v5 = vld [vmem:[%s5484_s7 + $0xc8] sm:$0xff] }
  0xeb   :  { %v996_v19 = vmul.bf16 %v980_v48, %v932_v36  ;;  %v988_v56 = vmul.bf16 %v972_v54, %v924_v12  ;;  %v567_v4 = vrot.slane %v4661_v41, %v4578_v29  ;;  %v579_v60 = vrot.slane %v4663_v42, %v4578_v29 }
  0xec   :  { %3300 = vperm.xlu0 %3869, %v3186_v3   ;;  %3305 = vperm.xlu1 %3870, %v3187_v7   ;;  %v783_v61 = vrot.slane %v775_v21, %v4578_v29  ;;  %v4722_v30 = vadd.bf16 %v3487_v43, %v374_v58  ;;  %v795_v31 = vrot.slane %v787_v22, %v4578_v29  ;;  %v943_v45 = vmul.bf16 1027030327, %v4715_v25 }
  0xed   :  { %v4693_v1 = vpop.f32.mrb[8].mxu0  ;;  %v4695_v13 = vpop.f32.mrb[8].mxu1  ;;  %v989_v34 = vmul.bf16 %v973_v16, %v925_v23  ;;  %3983 = vtanh.bf16 %v996_v19  ;;  %v997_v2 = vmul.bf16 %v981_v18, %v933_v32  ;;  %v4728_v3 = vadd.bf16 %v3488_v53, %v375_v50  ;;  %v3192_v50 = vld [vmem:[%s5484_s7 + $0xd0] sm:$0xff]  ;;  %v3195_v19 = vld [vmem:[%s5484_s7 + $0xe8] sm:$0xff] }
  0xee   :  { %v269_v33 = vpop.f32.mrb[9].mxu0  ;;  %v333_v26 = vpop.f32.mrb[9].mxu1  ;;  %3985 = vtanh.bf16 %v988_v56  ;;  %v3489_v6 = vcombine.low %v711_v35, %v723_v62  ;;  %v4734_v7 = vadd.bf16 %v4669_v44, %v366_v55  ;;  %v3481_v51 = vcombine.low %v519_v63, %v531_v0  ;;  %v3193_v44 = vld [vmem:[%s5484_s7 + $0xd8] sm:$0xff] }
  0xef   :  { %v3844_v37 = vpop.f32.mrb[10].mxu0  ;;  %v3860_v38 = vpop.f32.mrb[10].mxu1  ;;  %v3490_v52 = vcombine.low %v735_v40, %v747_v15  ;;  %v950_v58 = vmul.bf16 1027030327, %v4722_v30  ;;  %v3482_v55 = vcombine.low %v543_v17, %v555_v27  ;;  %v3491_v35 = vcombine.low %v759_v20, %v771_v57  ;;  %v3194_v15 = vld [vmem:[%s5484_s7 + $0xe0] sm:$0xff] }
  0xf0   :  { %3310 = vperm.xlu0 %3869, %v3188_v39   ;;  %3315 = vperm.xlu1 %3870, %v3189_v14   ;;  %v369_v41 = vpack.c.bf16 %v3844_v37, %v4693_v1  ;;  %v377_v42 = vpack.c.bf16 %v3860_v38, %v4695_v13  ;;  %v272_v47 = vpop.f32.mrb[11].mxu0  ;;  %v336_v43 = vpop.f32.mrb[11].mxu1  ;;  %v3483_v62 = vcombine.low %v567_v4, %v579_v60  ;;  %3987 = vtanh.bf16 %v997_v2 }
  0xf1   :  { %v368_v46 = vpack.c.bf16 %v272_v47, %v269_v33  ;;  %v583_v53 = vpop.permute.xlu0 %582  ;;  %v595_v54 = vpop.permute.xlu1 %594  ;;  %v376_v59 = vpack.c.bf16 %v336_v43, %v333_v26  ;;  %v3492_v12 = vcombine.low %v783_v61, %v795_v31  ;;  %v951_v1 = vmul.bf16 1027030327, %v4728_v3  ;;  %v3196_v31 = vld [vmem:[%s5484_s7 + $0xf0] sm:$0xff] }
  0xf2   :  { %3989 = vtanh.bf16 %v989_v34  ;;  %v591_v0 = vrot.slane %v583_v53, %v4578_v29  ;;  %v959_v40 = vmul.bf16 %v943_v45, %v4715_v25  ;;  %v942_v13 = vmul.bf16 1027030327, %v4734_v7  ;;  %v3197_v34 = vld [vmem:[%s5484_s7 + $0xf8] sm:$0xff] }
  0xf3   :  { %v4748_v63 = vadd.bf16 %v3481_v51, %v368_v46  ;;  %v4753_v14 = vadd.bf16 %v3489_v6, %v376_v59  ;;  %v603_v16 = vrot.slane %v595_v54, %v4578_v29  ;;  %v966_v18 = vmul.bf16 %v950_v58, %v4722_v30  ;;  %v3427_v59 = vld [vmem:[#allocation2] sm:$0x1] }
  0xf4   :  { %3320 = vperm.xlu0 %3869, %v3190_v28   ;;  %3325 = vperm.xlu1 %3870, %v3191_v5   ;;  %v916_v17 = vmul.bf16 1056980736, %v4628_v11  ;;  %v908_v27 = vmul.bf16 1056980736, %v4626_v10  ;;  %v4765_v20 = vadd.bf16 %v3482_v55, %v369_v41  ;;  %v4767_v21 = vadd.bf16 %v3490_v52, %v377_v42 }
  0xf5   :  { %v4736_v48 = vpop.f32.mrb[12].mxu0  ;;  %v4738_v49 = vpop.f32.mrb[12].mxu1  ;;  %v917_v28 = vmul.bf16 1056980736, %v4624_v9  ;;  %v909_v57 = vmul.bf16 1056980736, %v4622_v8  ;;  %v4772_v23 = vmul.bf16 %v951_v1, %v4728_v3  ;;  %v958_v60 = vmul.bf16 %v942_v13, %v4734_v7 }
  0xf6   :  { %v285_v36 = vpop.f32.mrb[13].mxu0  ;;  %v349_v39 = vpop.f32.mrb[13].mxu1  ;;  %v944_v32 = vmul.bf16 1027030327, %v4748_v63  ;;  %v975_v4 = vadd.bf16 1065369472, %v959_v40  ;;  %v3484_v38 = vcombine.low %v591_v0, %v603_v16 }
  0xf7   :  { %v3848_v22 = vpop.f32.mrb[14].mxu0  ;;  %v3864_v56 = vpop.f32.mrb[14].mxu1  ;;  %v952_v61 = vmul.bf16 1027030327, %v4753_v14  ;;  %v927_v2 = vmul.bf16 1061961548, %v4715_v25 }
  0xf8   :  { %3330 = vperm.xlu0 %3869, %v3192_v50   ;;  %3335 = vperm.xlu1 %3870, %v3193_v44   ;;  %v371_v33 = vpack.c.bf16 %v3848_v22, %v4736_v48  ;;  %v379_v11 = vpack.c.bf16 %v3864_v56, %v4738_v49  ;;  %v288_v10 = vpop.f32.mrb[15].mxu0  ;;  %v352_v26 = vpop.f32.mrb[15].mxu1  ;;  %v935_v41 = vmul.bf16 1061961548, %v4728_v3  ;;  %v982_v42 = vadd.bf16 1065369472, %v966_v18 }
  0xf9   :  { %v370_v5 = vpack.c.bf16 %v288_v10, %v285_v36  ;;  %v3984_v37 = vpop.eup %3983  ;;  %v945_v43 = vmul.bf16 1027030327, %v4765_v20  ;;  %v953_v6 = vmul.bf16 1027030327, %v4767_v21  ;;  %v378_v46 = vpack.c.bf16 %v352_v26, %v349_v39 }
  0xfa   :  { %v3986_v47 = vpop.eup %3985  ;;  %v983_v48 = vadd.bf16 1065369472, %v4772_v23  ;;  %v926_v49 = vmul.bf16 1061961548, %v4734_v7  ;;  %v934_v50 = vmul.bf16 1061961548, %v4722_v30  ;;  %v960_v51 = vmul.bf16 %v944_v32, %v4748_v63 }
  0xfb   :  { %v4789_v45 = vadd.bf16 %v3483_v62, %v370_v5  ;;  %v991_v52 = vmul.bf16 %v975_v4, %v927_v2  ;;  %v974_v53 = vadd.bf16 1065369472, %v958_v60  ;;  %v968_v54 = vmul.bf16 %v952_v61, %v4753_v14  ;;  %v3988_v44 = vpop.eup %3987 }
  0xfc   :  { %3340 = vperm.xlu0 %3869, %v3194_v15   ;;  %3345 = vperm.xlu1 %3870, %v3195_v19   ;;  %v4796_v58 = vadd.bf16 %v3491_v35, %v378_v46  ;;  %v4798_v55 = vadd.bf16 %v3492_v12, %v379_v11  ;;  %v1028_v62 = vadd.bf16 1065369472, %v3984_v37  ;;  %v1020_v36 = vadd.bf16 1065369472, %v3986_v47 }
  0xfd   :  { %v998_v39 = vmul.bf16 %v982_v42, %v934_v50  ;;  %v3990_v1 = vpop.eup %3989  ;;  %v961_v0 = vmul.bf16 %v945_v43, %v4765_v20  ;;  %v969_v40 = vmul.bf16 %v953_v6, %v4767_v21  ;;  %v946_v13 = vmul.bf16 1027030327, %v4789_v45 }
  0xfe   :  { %v954_v15 = vmul.bf16 1027030327, %v4796_v58  ;;  %v976_v16 = vadd.bf16 1065369472, %v960_v51  ;;  %v4804_v35 = vadd.bf16 %v3484_v38, %v371_v33  ;;  %v1044_v18 = vmul.bf16 %v1028_v62, %v916_v17 }
  0xff   :  { %v1036_v19 = vmul.bf16 %v1020_v36, %v908_v27  ;;  %v990_v12 = vmul.bf16 %v974_v53, %v926_v49  ;;  %v928_v22 = vmul.bf16 1061961548, %v4748_v63  ;;  %v984_v56 = vadd.bf16 1065369472, %v968_v54 }
 0x100   :  { %3350 = vperm.xlu0 %3869, %v3196_v31   ;;  %3355 = vperm.xlu1 %3870, %v3197_v34   ;;  %v970_v23 = vmul.bf16 %v954_v15, %v4796_v58  ;;  %v955_v32 = vmul.bf16 1027030327, %v4798_v55  ;;  %v1029_v11 = vadd.bf16 1065369472, %v3988_v44  ;;  %v1021_v10 = vadd.bf16 1065369472, %v3990_v1 }
 0x101   :  { %3607 = vmatprep.subr.bf16.mxu1 %v1044_v18  ;;  %3991 = vtanh.bf16 %v998_v39  ;;  %v929_v26 = vmul.bf16 1061961548, %v4765_v20  ;;  %v977_v4 = vadd.bf16 1065369472, %v961_v0  ;;  %v936_v33 = vmul.bf16 1061961548, %v4753_v14 }
 0x102   :  { %v962_v17 = vmul.bf16 %v946_v13, %v4789_v45  ;;  %3608 = vmatpush3.bf16.msra.mxu1 %v1036_v19  ;;  %v985_v27 = vadd.bf16 1065369472, %v969_v40  ;;  %v992_v60 = vmul.bf16 %v976_v16, %v928_v22  ;;  %v947_v61 = vmul.bf16 1027030327, %v4804_v35 }
 0x103   :  { %v1045_v5 = vmul.bf16 %v1029_v11, %v917_v28  ;;  %v986_v31 = vadd.bf16 1065369472, %v970_v23  ;;  %v1037_v34 = vmul.bf16 %v1021_v10, %v909_v57  ;;  %3993 = vtanh.bf16 %v990_v12 }
 0x104   :  { %3430 = vperm.xlu0 %3869, %v3427_v59   ;;  %v999_v37 = vmul.bf16 %v983_v48, %v935_v41  ;;  %v937_v38 = vmul.bf16 1061961548, %v4767_v21  ;;  %v971_v2 = vmul.bf16 %v955_v32, %v4798_v55  ;;  %3995 = vtanh.bf16 %v991_v52 }
 0x105   :  { %3609 = vmatprep.subr.bf16.mxu1 %v1045_v5  ;;  %v1000_v42 = vmul.bf16 %v984_v56, %v936_v33  ;;  %v978_v47 = vadd.bf16 1065369472, %v962_v17  ;;  %v938_v43 = vmul.bf16 1061961548, %v4796_v58  ;;  %v993_v9 = vmul.bf16 %v977_v4, %v929_v26 }
 0x106   :  { %3610 = vmatpush3.bf16.msra.mxu1 %v1037_v34  ;;  %3997 = vtanh.bf16 %v999_v37  ;;  %v1001_v28 = vmul.bf16 %v985_v27, %v937_v38  ;;  %v963_v8 = vmul.bf16 %v947_v61, %v4804_v35  ;;  %v930_v57 = vmul.bf16 1061961548, %v4789_v45 }
 0x107   :  { %3999 = vtanh.bf16 %v1000_v42  ;;  %v1002_v41 = vmul.bf16 %v986_v31, %v938_v43  ;;  %v987_v6 = vadd.bf16 1065369472, %v971_v2  ;;  %v939_v48 = vmul.bf16 1061961548, %v4798_v55 }
 0x108   :  { %4001 = vtanh.bf16 %v992_v60  ;;  %v994_v46 = vmul.bf16 %v978_v47, %v930_v57  ;;  %v979_v50 = vadd.bf16 1065369472, %v963_v8  ;;  %v918_v51 = vmul.bf16 1056980736, %v4722_v30  ;;  %v3895_v8 = vld [vmem:[%s5483_s3 + $0x20] ss:$8 sps:$4 sm:$0xff]  }
 0x109   :  { %4003 = vtanh.bf16 %v1001_v28  ;;  %v1003_v53 = vmul.bf16 %v987_v6, %v939_v48  ;;  %v931_v54 = vmul.bf16 1061961548, %v4804_v35  ;;  %v910_v39 = vmul.bf16 1056980736, %v4734_v7  ;;  %v3887_v28 = vld [vmem:[%s5483_s3] ss:$8 sps:$4 sm:$0xff]  }
 0x10a   :  { %4005 = vtanh.bf16 %v1002_v41  ;;  %v919_v15 = vmul.bf16 1056980736, %v4728_v3  ;;  %v920_v19 = vmul.bf16 1056980736, %v4753_v14  ;;  %v911_v23 = vmul.bf16 1056980736, %v4715_v25 }
 0x10b   :  { %4007 = vtanh.bf16 %v993_v9  ;;  %v995_v36 = vmul.bf16 %v979_v50, %v931_v54  ;;  %v912_v26 = vmul.bf16 1056980736, %v4748_v63  ;;  %v921_v14 = vmul.bf16 1056980736, %v4767_v21  ;;  %v3896_v57 = vld [vmem:[%s5483_s3 + $0x34] ss:$8 sps:$4 sm:$0xff]  }
 0x10c   :  { %v3992_v49 = vpop.eup %3991  ;;  %4009 = vtanh.bf16 %v994_v46  ;;  %v922_v25 = vmul.bf16 1056980736, %v4796_v58  ;;  %v913_v31 = vmul.bf16 1056980736, %v4765_v20  ;;  %v914_v38 = vmul.bf16 1056980736, %v4789_v45 }
 0x10d   :  { %v1030_v52 = vadd.bf16 1065369472, %v3992_v49  ;;  %4011 = vtanh.bf16 %v1003_v53  ;;  %v923_v21 = vmul.bf16 1056980736, %v4798_v55  ;;  %v915_v58 = vmul.bf16 1056980736, %v4804_v35 }
 0x10e   :  { %v3994_v59 = vpop.eup %3993  ;;  %4013 = vtanh.bf16 %v995_v36  ;;  %v3890_v45 = vld [vmem:[%s5483_s3 + $0x14] ss:$8 sps:$4 sm:$0xff]   ;;  %v3892_v55 = vld [vmem:[%s5483_s3 + $0x10] ss:$8 sps:$4 sm:$0xff]   ;;  %v3893_v35 = vld [vmem:[%s5483_s3 + $0x24] ss:$8 sps:$4 sm:$0xff]  }
 0x10f   :  { %v1046_v44 = vmul.bf16 %v1030_v52, %v918_v51  ;;  %v3996_v62 = vpop.eup %3995  ;;  %v1022_v1 = vadd.bf16 1065369472, %v3994_v59  ;;  %v3898_v41 = vld [vmem:[%s5483_s3 + $0x30] ss:$8 sps:$4 sm:$0xff]   ;;  %v3899_v6 = vld [vmem:[%s5483_s3 + $0x44] ss:$8 sps:$4 sm:$0xff]  }
 0x110   :  { %v1023_v16 = vadd.bf16 1065369472, %v3996_v62  ;;  %v3901_v46 = vld [vmem:[%s5483_s3 + $0x40] ss:$8 sps:$4 sm:$0xff]   ;;  %v3902_v48 = vld [vmem:[%s5483_s3 + $0x54] ss:$8 sps:$4 sm:$0xff]  }
 0x111   :  { %v3998_v0 = vpop.eup %3997  ;;  %3611 = vmatprep.subr.bf16.mxu1 %v1046_v44  ;;  %v1038_v13 = vmul.bf16 %v1022_v1, %v910_v39  ;;  %v3904_v49 = vld [vmem:[%s5483_s3 + $0x50] ss:$8 sps:$4 sm:$0xff]   ;;  %v3905_v50 = vld [vmem:[%s5483_s3 + $0x64] ss:$8 sps:$4 sm:$0xff]   ;;  %v3907_v51 = vld [vmem:[%s5483_s3 + $0x60] ss:$8 sps:$4 sm:$0xff]  }
 0x112   :  { %v4000_v40 = vpop.eup %3999  ;;  %v1031_v30 = vadd.bf16 1065369472, %v3998_v0  ;;  %v1039_v10 = vmul.bf16 %v1023_v16, %v911_v23  ;;  %v3908_v52 = vld [vmem:[%s5483_s3 + $0x74] ss:$8 sps:$4 sm:$0xff]   ;;  %v3910_v53 = vld [vmem:[%s5483_s3 + $0x70] ss:$8 sps:$4 sm:$0xff]  }
 0x113   :  { %v4002_v18 = vpop.eup %4001  ;;  %v1032_v12 = vadd.bf16 1065369472, %v4000_v40  ;;  %3612 = vmatpush3.bf16.msra.mxu1 %v1038_v13  ;;  %v3911_v54 = vld [vmem:[%s5483_s3 + $0x84] ss:$8 sps:$4 sm:$0xff]   ;;  %v3913_v59 = vld [vmem:[%s5483_s3 + $0x80] ss:$8 sps:$4 sm:$0xff]  }
 0x114   :  { %v4004_v22 = vpop.eup %4003  ;;  %v1047_v56 = vmul.bf16 %v1031_v30, %v919_v15  ;;  %v1024_v7 = vadd.bf16 1065369472, %v4002_v18  ;;  %v3914_v44 = vld [vmem:[%s5483_s3 + $0x94] ss:$8 sps:$4 sm:$0xff]   ;;  %v3916_v62 = vld [vmem:[%s5483_s3 + $0x90] ss:$8 sps:$4 sm:$0xff]  }
 0x115   :  { %v1048_v32 = vmul.bf16 %v1032_v12, %v920_v19  ;;  %v4006_v11 = vpop.eup %4005  ;;  %v1033_v4 = vadd.bf16 1065369472, %v4004_v22  ;;  %v3917_v36 = vld [vmem:[%s5483_s3 + $0xa4] ss:$8 sps:$4 sm:$0xff]   ;;  %v3919_v39 = vld [vmem:[%s5483_s3 + $0xa0] ss:$8 sps:$4 sm:$0xff]  }
 0x116   :  { %3613 = vmatprep.subr.bf16.mxu1 %v1047_v56  ;;  %v4008_v3 = vpop.eup %4007  ;;  %v1040_v33 = vmul.bf16 %v1024_v7, %v912_v26  ;;  %v1034_v27 = vadd.bf16 1065369472, %v4006_v11  ;;  %v3920_v1 = vld [vmem:[%s5483_s3 + $0xb4] ss:$8 sps:$4 sm:$0xff]   ;;  %v3922_v0 = vld [vmem:[%s5483_s3 + $0xb0] ss:$8 sps:$4 sm:$0xff]  }
 0x117   :  { %3614 = vmatpush3.bf16.msra.mxu1 %v1039_v10  ;;  %v4010_v17 = vpop.eup %4009  ;;  %v1025_v60 = vadd.bf16 1065369472, %v4008_v3  ;;  %v1049_v61 = vmul.bf16 %v1033_v4, %v921_v14  ;;  %v3923_v40 = vld [vmem:[%s5483_s3 + $0xc4] ss:$8 sps:$4 sm:$0xff]   ;;  %v3925_v13 = vld [vmem:[%s5483_s3 + $0xc0] ss:$8 sps:$4 sm:$0xff]  }
 0x118   :  { %3615 = vmatprep.subr.bf16.mxu1 %v1048_v32  ;;  %v4012_v5 = vpop.eup %4011  ;;  %v1026_v34 = vadd.bf16 1065369472, %v4010_v17  ;;  %v1050_v63 = vmul.bf16 %v1034_v27, %v922_v25  ;;  %v3926_v15 = vld [vmem:[%s5483_s3 + $0xd4] ss:$8 sps:$4 sm:$0xff]   ;;  %v3928_v30 = vld [vmem:[%s5483_s3 + $0xd0] ss:$8 sps:$4 sm:$0xff]  }
 0x119   :  { %v1041_v37 = vmul.bf16 %v1025_v60, %v913_v31  ;;  %v4014_v2 = vpop.eup %4013  ;;  %v1035_v42 = vadd.bf16 1065369472, %v4012_v5  ;;  %v3929_v16 = vld [vmem:[%s5483_s3 + $0xe4] ss:$8 sps:$4 sm:$0xff]   ;;  %v3931_v18 = vld [vmem:[%s5483_s3 + $0xe0] ss:$8 sps:$4 sm:$0xff]   ;;  %v4941_v60 = vpop.permute.xlu0 %1647 }
 0x11a   :  { %v1042_v47 = vmul.bf16 %v1026_v34, %v914_v38  ;;  %v1027_v43 = vadd.bf16 1065369472, %v4014_v2  ;;  %v3932_v19 = vld [vmem:[%s5483_s3 + $0xf4] ss:$8 sps:$4 sm:$0xff]   ;;  %v3934_v12 = vld [vmem:[%s5483_s3 + $0xf0] ss:$8 sps:$4 sm:$0xff]  }
 0x11b   :  { %3616 = vmatpush3.bf16.msra.mxu1 %v1040_v33  ;;  %v1051_v9 = vmul.bf16 %v1035_v42, %v923_v21 }
 0x11c   :  { %3617 = vmatprep.subr.bf16.mxu1 %v1049_v61  ;;  %v1043_v20 = vmul.bf16 %v1027_v43, %v915_v58  ;;  %v4943_v61 = vpop.permute.xlu1 %1659 }
 0x11d   :  { %v1456_v38 = vpop.permute.xlu0 %1455 }
 0x11f   :  { %3618 = vmatpush3.bf16.msra.mxu1 %v1041_v37 }
 0x120   :  { %3619 = vmatprep.subr.bf16.mxu1 %v1050_v63  ;;  %v1468_v2 = vpop.permute.xlu1 %1467 }
 0x121   :  { %v4953_v58 = vpop.permute.xlu0 %1671 }
 0x123   :  { %3620 = vmatpush3.bf16.msra.mxu1 %v1042_v47 }
 0x124   :  { %3621 = vmatprep.subr.bf16.mxu1 %v1051_v9 }
 0x127   :  { %3622 = vmatpush3.bf16.msra.mxu1 %v1043_v20 }
 0x12a   :  { %1277 = vmatmul.mubr.bf16.vlgmr.msra.gmra.mrb[16].mxu1 %v3887_v28  ;;  %v4955_v28 = vpop.permute.xlu1 %1683 }
 0x12b   :  { %1284 = vmatprep.mubr.bf16.mxu1 %v3890_v45 }
 0x132   :  { %1285 = vmatmul.mubr.bf16.gmra.mrb[20].mxu1 %v3892_v55  ;;  %v3937_v55 = vld [vmem:[%s5485_s5 + $0x4] ss:$8 sps:$4 sm:$0xff]  }
 0x133   :  { %1292 = vmatprep.mubr.bf16.mxu1 %v3893_v35  ;;  %2317 = vmatprep.mubr.bf16.mxu0 %v3937_v55 }
 0x13a   :  { %1293 = vmatmul.mubr.bf16.gmra.mrb[24].mxu1 %v3895_v8 }
 0x13b   :  { %1300 = vmatprep.mubr.bf16.mxu1 %v3896_v57  ;;  %v1480_v57 = vpop.permute.xlu0 %1479 }
 0x142   :  { %1301 = vmatmul.mubr.bf16.gmra.mrb[28].mxu1 %v3898_v41 }
 0x143   :  { %1308 = vmatprep.mubr.bf16.mxu1 %v3899_v6  ;;  %v1492_v6 = vpop.permute.xlu1 %1491 }
 0x14a   :  { %1309 = vmatmul.mubr.bf16.gmra.mrb[32].mxu1 %v3901_v46 }
 0x14b   :  { %1316 = vmatprep.mubr.bf16.mxu1 %v3902_v48 }
 0x152   :  { %1317 = vmatmul.mubr.bf16.gmra.mrb[36].mxu1 %v3904_v49 }
 0x153   :  { %1324 = vmatprep.mubr.bf16.mxu1 %v3905_v50 }
 0x15a   :  { %1325 = vmatmul.mubr.bf16.gmra.mrb[40].mxu1 %v3907_v51 }
 0x15b   :  { %1332 = vmatprep.mubr.bf16.mxu1 %v3908_v52  ;;  %v4970_v52 = vpop.permute.xlu0 %1695 }
 0x162   :  { %1333 = vmatmul.mubr.bf16.gmra.mrb[44].mxu1 %v3910_v53  ;;  %v4972_v53 = vpop.permute.xlu1 %1707 }
 0x163   :  { %1340 = vmatprep.mubr.bf16.mxu1 %v3911_v54 }
 0x16a   :  { %1341 = vmatmul.mubr.bf16.gmra.mrb[48].mxu1 %v3913_v59 }
 0x16b   :  { %1348 = vmatprep.mubr.bf16.mxu1 %v3914_v44 }
 0x172   :  { %1349 = vmatmul.mubr.bf16.gmra.mrb[52].mxu1 %v3916_v62 }
 0x173   :  { %1356 = vmatprep.mubr.bf16.mxu1 %v3917_v36 }
 0x17a   :  { %1357 = vmatmul.mubr.bf16.gmra.mrb[56].mxu1 %v3919_v39 }
 0x17b   :  { %1364 = vmatprep.mubr.bf16.mxu1 %v3920_v1  ;;  %v1504_v1 = vpop.permute.xlu0 %1503 }
 0x182   :  { %1365 = vmatmul.mubr.bf16.gmra.mrb[60].mxu1 %v3922_v0  ;;  %v1516_v0 = vpop.permute.xlu1 %1515 }
 0x183   :  { %1372 = vmatprep.mubr.bf16.mxu1 %v3923_v40 }
 0x18a   :  { %1373 = vmatmul.mubr.bf16.gmra.mrb[64].mxu1 %v3925_v13 }
 0x18b   :  { %1380 = vmatprep.mubr.bf16.mxu1 %v3926_v15 }
 0x192   :  { %1381 = vmatmul.mubr.bf16.gmra.mrb[68].mxu1 %v3928_v30 }
 0x193   :  { %1388 = vmatprep.mubr.bf16.mxu1 %v3929_v16 }
 0x19a   :  { %1389 = vmatmul.mubr.bf16.gmra.mrb[72].mxu1 %v3931_v18  ;;  %v4982_v18 = vpop.permute.xlu0 %1719 }
 0x19b   :  { %1396 = vmatprep.mubr.bf16.mxu1 %v3932_v19 }
 0x1a2   :  { %1397 = vmatmul.mubr.bf16.gmra.mrb[76].mxu1 %v3934_v12  ;;  %v4984_v12 = vpop.permute.xlu1 %1731 }
 0x1fd   :  { %v3623_v22 = vpop.f32.mrb[16].mxu1 }
 0x1fe   :  { %v3624_v56 = vpop.f32.mrb[17].mxu1 }
 0x1ff   :  { %v4929_v23 = vadd.f32 %v3624_v56, %v3623_v22  ;;  %v3626_v7 = vpop.f32.mrb[18].mxu1  ;;  %v1464_v56 = vrot.slane %v1456_v38, %v4578_v29 }
 0x200   :  { %v3627_v32 = vpop.f32.mrb[19].mxu1 }
 0x201   :  { %v4931_v11 = vadd.f32 %v3627_v32, %v3626_v7  ;;  %v1476_v7 = vrot.slane %v1468_v2, %v4578_v29 }
 0x203   :  { %v1405_v10 = vpack.c.bf16 %v4931_v11, %v4929_v23 }
 0x205   :  { %v3629_v26 = vpop.f32.mrb[20].mxu1 }
 0x206   :  { %v3630_v3 = vpop.f32.mrb[21].mxu1 }
 0x207   :  { %v4935_v4 = vadd.f32 %v3630_v3, %v3629_v26  ;;  %v3632_v33 = vpop.f32.mrb[22].mxu1  ;;  %v3525_v3 = vcombine.low %v1464_v56, %v1476_v7 }
 0x208   :  { %v3633_v17 = vpop.f32.mrb[23].mxu1 }
 0x209   :  { %v4937_v14 = vadd.f32 %v3633_v17, %v3632_v33  ;;  %v4992_v33 = vpop.permute.xlu0 %1527 }
 0x20b   :  { %v1406_v27 = vpack.c.bf16 %v4937_v14, %v4935_v4 }
 0x20d   :  { %v3635_v25 = vpop.f32.mrb[24].mxu1 }
 0x20e   :  { %v3636_v5 = vpop.f32.mrb[25].mxu1 }
 0x20f   :  { %v4945_v31 = vadd.f32 %v3636_v5, %v3635_v25  ;;  %v3638_v34 = vpop.f32.mrb[26].mxu1  ;;  %v4994_v25 = vpop.permute.xlu1 %1539 }
 0x210   :  { %v3639_v63 = vpop.f32.mrb[27].mxu1 }
 0x211   :  { %v4947_v37 = vadd.f32 %v3639_v63, %v3638_v34  ;;  %v5001_v63 = vadd.bf16 %v3525_v3, %v1405_v10  ;;  %v1656_v10 = vrot.slane %v4941_v60, %v4578_v29 }
 0x213   :  { %v1407_v42 = vpack.c.bf16 %v4947_v37, %v4945_v31  ;;  %v1981_v55 = vmul.bf16 1027030327, %v5001_v63 }
 0x215   :  { %v3641_v47 = vpop.f32.mrb[28].mxu1 }
 0x216   :  { %v3642_v21 = vpop.f32.mrb[29].mxu1 }
 0x217   :  { %v4951_v43 = vadd.f32 %v3642_v21, %v3641_v47  ;;  %v3644_v9 = vpop.f32.mrb[30].mxu1  ;;  %v1488_v47 = vrot.slane %v1480_v57, %v4578_v29  ;;  %v1500_v21 = vrot.slane %v1492_v6, %v4578_v29  ;;  %v1668_v57 = vrot.slane %v4943_v61, %v4578_v29 }
 0x218   :  { %v3645_v20 = vpop.f32.mrb[31].mxu1 }
 0x219   :  { %v4957_v45 = vadd.f32 %v3645_v20, %v3644_v9  ;;  %v5009_v20 = vpop.permute.xlu0 %1743  ;;  %v3526_v23 = vcombine.low %v1488_v47, %v1500_v21  ;;  %v3533_v60 = vcombine.low %v1656_v10, %v1668_v57  ;;  %v1548_v10 = vrot.slane %v4994_v25, %v4578_v29 }
 0x21b   :  { %v1408_v35 = vpack.c.bf16 %v4957_v45, %v4951_v43 }
 0x21d   :  { %v3647_v8 = vpop.f32.mrb[32].mxu1 }
 0x21e   :  { %v3648_v41 = vpop.f32.mrb[33].mxu1 }
 0x21f   :  { %v4964_v46 = vadd.f32 %v3648_v41, %v3647_v8  ;;  %v3650_v48 = vpop.f32.mrb[34].mxu1  ;;  %v5012_v8 = vpop.permute.xlu1 %1755 }
 0x220   :  { %v3651_v49 = vpop.f32.mrb[35].mxu1 }
 0x221   :  { %v4966_v50 = vadd.f32 %v3651_v49, %v3650_v48  ;;  %v1997_v49 = vmul.bf16 %v1981_v55, %v5001_v63 }
 0x223   :  { %v1409_v51 = vpack.c.bf16 %v4966_v50, %v4964_v46 }
 0x225   :  { %v3653_v54 = vpop.f32.mrb[36].mxu1 }
 0x226   :  { %v3654_v59 = vpop.f32.mrb[37].mxu1 }
 0x227   :  { %v4974_v44 = vadd.f32 %v3654_v59, %v3653_v54  ;;  %v3656_v62 = vpop.f32.mrb[38].mxu1  ;;  %v5022_v54 = vadd.bf16 %v3526_v23, %v1406_v27  ;;  %v1965_v27 = vmul.bf16 1061961548, %v5001_v63 }
 0x228   :  { %v3657_v36 = vpop.f32.mrb[39].mxu1 }
 0x229   :  { %v4976_v39 = vadd.f32 %v3657_v36, %v3656_v62  ;;  %v1512_v36 = vrot.slane %v1504_v1, %v4578_v29  ;;  %v1982_v56 = vmul.bf16 1027030327, %v5022_v54  ;;  %v1680_v1 = vrot.slane %v4953_v58, %v4578_v29 }
 0x22a   :  { %v1966_v25 = vmul.bf16 1061961548, %v5022_v54 }
 0x22b   :  { %v1410_v40 = vpack.c.bf16 %v4976_v39, %v4974_v44  ;;  %v1998_v47 = vmul.bf16 %v1982_v56, %v5022_v54 }
 0x22d   :  { %v3659_v13 = vpop.f32.mrb[40].mxu1  ;;  %v2014_v37 = vadd.bf16 1065369472, %v1998_v47 }
 0x22e   :  { %v3660_v15 = vpop.f32.mrb[41].mxu1 }
 0x22f   :  { %v4980_v30 = vadd.f32 %v3660_v15, %v3659_v13  ;;  %v3662_v16 = vpop.f32.mrb[42].mxu1  ;;  %v1524_v13 = vrot.slane %v1516_v0, %v4578_v29  ;;  %v5026_v15 = vpop.permute.xlu0 %1551  ;;  %v1692_v0 = vrot.slane %v4955_v28, %v4578_v29 }
 0x230   :  { %v3663_v19 = vpop.f32.mrb[43].mxu1 }
 0x231   :  { %v4986_v22 = vadd.f32 %v3663_v19, %v3662_v16  ;;  %v5028_v16 = vpop.permute.xlu1 %1563  ;;  %v2013_v19 = vadd.bf16 1065369472, %v1997_v49  ;;  %v3527_v14 = vcombine.low %v1512_v36, %v1524_v13  ;;  %v3534_v57 = vcombine.low %v1680_v1, %v1692_v0 }
 0x232   :  { %v1704_v36 = vrot.slane %v4970_v52, %v4578_v29  ;;  %v2030_v1 = vmul.bf16 %v2014_v37, %v1966_v25  ;;  %v1752_v25 = vrot.slane %v5009_v20, %v4578_v29 }
 0x233   :  { %v1411_v32 = vpack.c.bf16 %v4986_v22, %v4980_v30  ;;  %v5045_v21 = vadd.bf16 %v3527_v14, %v1407_v42 }
 0x235   :  { %v3665_v26 = vpop.f32.mrb[44].mxu1  ;;  %v5047_v23 = vpop.permute.xlu1 %1779  ;;  %v1983_v42 = vmul.bf16 1027030327, %v5045_v21 }
 0x236   :  { %v3666_v17 = vpop.f32.mrb[45].mxu1 }
 0x237   :  { %v4996_v5 = vadd.f32 %v3666_v17, %v3665_v26  ;;  %v3668_v34 = vpop.f32.mrb[46].mxu1 }
 0x238   :  { %v3669_v38 = vpop.f32.mrb[47].mxu1 }
 0x239   :  { %v5003_v2 = vadd.f32 %v3669_v38, %v3668_v34  ;;  %v5039_v38 = vpop.permute.xlu0 %1767 }
 0x23b   :  { %v1412_v9 = vpack.c.bf16 %v5003_v2, %v4996_v5 }
 0x23d   :  { %v3671_v41 = vpop.f32.mrb[48].mxu1  ;;  %v5060_v13 = vpop.permute.xlu0 %1575 }
 0x23e   :  { %v3672_v11 = vpop.f32.mrb[49].mxu1 }
 0x23f   :  { %v3673_v48 = vadd.f32 %v3672_v11, %v3671_v41  ;;  %v3674_v6 = vpop.f32.mrb[50].mxu1  ;;  %v2029_v41 = vmul.bf16 %v2013_v19, %v1965_v27  ;;  %v1536_v11 = vrot.slane %v4992_v33, %v4578_v29  ;;  %v5065_v19 = vpop.permute.xlu1 %1587  ;;  %v1999_v27 = vmul.bf16 %v1983_v42, %v5045_v21 }
 0x240   :  { %v3675_v59 = vpop.f32.mrb[51].mxu1 }
 0x241   :  { %v3676_v62 = vadd.f32 %v3675_v59, %v3674_v6  ;;  %4015 = vtanh.bf16 %v2029_v41  ;;  %v3528_v33 = vcombine.low %v1536_v11, %v1548_v10  ;;  %v2015_v43 = vadd.bf16 1065369472, %v1999_v27 }
 0x243   :  { %v1413_v61 = vpack.c.bf16 %v3676_v62, %v3673_v48  ;;  %v5072_v52 = vadd.bf16 %v3528_v33, %v1408_v35  ;;  %v1728_v35 = vrot.slane %v4982_v18, %v4578_v29 }
 0x245   :  { %v5031_v7 = vadd.bf16 %v3533_v60, %v1413_v61  ;;  %v3677_v4 = vpop.f32.mrb[52].mxu1  ;;  %v1716_v61 = vrot.slane %v4972_v53, %v4578_v29  ;;  %v1560_v53 = vrot.slane %v5026_v15, %v4578_v29  ;;  %v1984_v45 = vmul.bf16 1027030327, %v5072_v52 }
 0x246   :  { %v3678_v26 = vpop.f32.mrb[53].mxu1  ;;  %v1740_v15 = vrot.slane %v4984_v12, %v4578_v29  ;;  %v1952_v2 = vmul.bf16 1056980736, %v5072_v52 }
 0x247   :  { %v1989_v3 = vmul.bf16 1027030327, %v5031_v7  ;;  %v3679_v17 = vadd.f32 %v3678_v26, %v3677_v4  ;;  %v3680_v34 = vpop.f32.mrb[54].mxu1  ;;  %v1973_v6 = vmul.bf16 1061961548, %v5031_v7  ;;  %v2000_v18 = vmul.bf16 %v1984_v45, %v5072_v52 }
 0x248   :  { %v3681_v55 = vpop.f32.mrb[55].mxu1  ;;  %v3536_v33 = vcombine.low %v1728_v35, %v1740_v15  ;;  %v1957_v46 = vmul.bf16 1056980736, %v5031_v7 }
 0x249   :  { %v3682_v58 = vadd.f32 %v3681_v55, %v3680_v34  ;;  %v2005_v28 = vmul.bf16 %v1989_v3, %v5031_v7  ;;  %v3535_v34 = vcombine.low %v1704_v36, %v1716_v61 }
 0x24b   :  { %v1414_v48 = vpack.c.bf16 %v3682_v58, %v3679_v17  ;;  %v2021_v31 = vadd.bf16 1065369472, %v2005_v28  ;;  %v1572_v17 = vrot.slane %v5028_v16, %v4578_v29  ;;  %v5080_v58 = vpop.permute.xlu0 %1791  ;;  %v5087_v28 = vpop.permute.xlu1 %1803 }
 0x24d   :  { %v5056_v49 = vadd.bf16 %v3534_v57, %v1414_v48  ;;  %v3683_v59 = vpop.f32.mrb[56].mxu1  ;;  %v2037_v62 = vmul.bf16 %v2021_v31, %v1973_v6  ;;  %v3529_v57 = vcombine.low %v1560_v53, %v1572_v17  ;;  %v1967_v48 = vmul.bf16 1061961548, %v5045_v21  ;;  %v4016_v31 = vpop.eup %4015 }
 0x24e   :  { %v3684_v60 = vpop.f32.mrb[57].mxu1  ;;  %v2061_v50 = vadd.bf16 1065369472, %v4016_v31  ;;  %v1949_v17 = vmul.bf16 1056980736, %v5001_v63 }
 0x24f   :  { %v1990_v56 = vmul.bf16 1027030327, %v5056_v49  ;;  %v3685_v4 = vadd.f32 %v3684_v60, %v3683_v59  ;;  %v3686_v14 = vpop.f32.mrb[58].mxu1  ;;  %4017 = vtanh.bf16 %v2037_v62  ;;  %v1974_v55 = vmul.bf16 1061961548, %v5056_v49  ;;  %v1600_v27 = vpop.permute.xlu0 %1599 }
 0x250   :  { %v3687_v26 = vpop.f32.mrb[59].mxu1  ;;  %4019 = vtanh.bf16 %v2030_v1  ;;  %v5097_v12 = vadd.bf16 %v3529_v57, %v1409_v51  ;;  %v2031_v36 = vmul.bf16 %v2015_v43, %v1967_v48  ;;  %v1612_v51 = vpop.permute.xlu1 %1611  ;;  %v2077_v45 = vmul.bf16 %v2061_v50, %v1949_v17 }
 0x251   :  { %v3688_v0 = vadd.f32 %v3687_v26, %v3686_v14  ;;  %v2006_v3 = vmul.bf16 %v1990_v56, %v5056_v49  ;;  %v1596_v14 = vrot.slane %v5065_v19, %v4578_v29  ;;  %v1958_v44 = vmul.bf16 1056980736, %v5056_v49 }
 0x252   :  { %v1985_v53 = vmul.bf16 1027030327, %v5097_v12 }
 0x253   :  { %v1415_v47 = vpack.c.bf16 %v3688_v0, %v3685_v4  ;;  %v2022_v41 = vadd.bf16 1065369472, %v2006_v3  ;;  %v1584_v4 = vrot.slane %v5060_v13, %v4578_v29  ;;  %v2016_v3 = vadd.bf16 1065369472, %v2000_v18  ;;  %v5116_v63 = vpop.permute.xlu0 %1815 }
 0x254   :  { %v1764_v13 = vrot.slane %v5012_v8, %v4578_v29  ;;  %v2001_v8 = vmul.bf16 %v1985_v53, %v5097_v12 }
 0x255   :  { %v5089_v16 = vadd.bf16 %v3535_v34, %v1415_v47  ;;  %v3689_v11 = vpop.f32.mrb[60].mxu1  ;;  %v2038_v10 = vmul.bf16 %v2022_v41, %v1974_v55  ;;  %v3530_v55 = vcombine.low %v1584_v4, %v1596_v14  ;;  %v1968_v41 = vmul.bf16 1061961548, %v5072_v52 }
 0x256   :  { %v3690_v6 = vpop.f32.mrb[61].mxu1  ;;  %v3537_v31 = vcombine.low %v1752_v25, %v1764_v13  ;;  %v1950_v4 = vmul.bf16 1056980736, %v5022_v54  ;;  %v1788_v14 = vrot.slane %v5047_v23, %v4578_v29 }
 0x257   :  { %v1991_v37 = vmul.bf16 1027030327, %v5089_v16  ;;  %v3691_v42 = vadd.f32 %v3690_v6, %v3689_v11  ;;  %v3692_v59 = vpop.f32.mrb[62].mxu1  ;;  %4021 = vtanh.bf16 %v2038_v10  ;;  %v1975_v0 = vmul.bf16 1061961548, %v5089_v16 }
 0x258   :  { %v3693_v62 = vpop.f32.mrb[63].mxu1  ;;  %4023 = vtanh.bf16 %v2031_v36  ;;  %v5122_v57 = vadd.bf16 %v3530_v55, %v1410_v40  ;;  %v2032_v6 = vmul.bf16 %v2016_v3, %v1968_v41  ;;  %v1608_v36 = vrot.slane %v1600_v27, %v4578_v29 }
 0x259   :  { %v3694_v60 = vadd.f32 %v3693_v62, %v3692_v59  ;;  %v2007_v61 = vmul.bf16 %v1991_v37, %v5089_v16  ;;  %v1776_v37 = vrot.slane %v5039_v38, %v4578_v29 }
 0x25a   :  { %v4018_v56 = vpop.eup %4017  ;;  %v1986_v38 = vmul.bf16 1027030327, %v5122_v57 }
 0x25b   :  { %v1416_v26 = vpack.c.bf16 %v3694_v60, %v3691_v42  ;;  %v2069_v1 = vadd.bf16 1065369472, %v4018_v56  ;;  %v2023_v20 = vadd.bf16 1065369472, %v2007_v61  ;;  %v4020_v35 = vpop.eup %4019  ;;  %v5126_v42 = vpop.permute.xlu1 %1827  ;;  %v2017_v56 = vadd.bf16 1065369472, %v2001_v8 }
 0x25c   :  { %v2062_v39 = vadd.bf16 1065369472, %v4020_v35  ;;  %v2002_v23 = vmul.bf16 %v1986_v38, %v5122_v57  ;;  %v3538_v55 = vcombine.low %v1776_v37, %v1788_v14  ;;  %v1800_v37 = vrot.slane %v5080_v58, %v4578_v29 }
 0x25d   :  { %v5112_v19 = vadd.bf16 %v3536_v33, %v1416_v26  ;;  %v3695_v34 = vpop.f32.mrb[64].mxu1  ;;  %v2085_v7 = vmul.bf16 %v2069_v1, %v1957_v46  ;;  %v2039_v47 = vmul.bf16 %v2023_v20, %v1975_v0  ;;  %v1620_v33 = vrot.slane %v1612_v51, %v4578_v29  ;;  %v1624_v26 = vpop.permute.xlu0 %1623 }
 0x25e   :  { %v3696_v43 = vpop.f32.mrb[65].mxu1  ;;  %v1969_v1 = vmul.bf16 1061961548, %v5097_v12  ;;  %v2078_v20 = vmul.bf16 %v2062_v39, %v1950_v4  ;;  %v1632_v35 = vrot.slane %v1624_v26, %v4578_v29 }
 0x25f   :  { %v1992_v15 = vmul.bf16 1027030327, %v5112_v19  ;;  %v3697_v11 = vadd.f32 %v3696_v43, %v3695_v34  ;;  %v3698_v10 = vpop.f32.mrb[66].mxu1  ;;  %3719 = vmatprep.subr.bf16.mxu0 %v2085_v7  ;;  %4025 = vtanh.bf16 %v2039_v47  ;;  %v1976_v25 = vmul.bf16 1061961548, %v5112_v19  ;;  %v1636_v53 = vpop.permute.xlu1 %1635 }
 0x260   :  { %v3699_v48 = vpop.f32.mrb[67].mxu1  ;;  %3720 = vmatpush3.bf16.msra.mxu0 %v2077_v45  ;;  %4027 = vtanh.bf16 %v2032_v6  ;;  %v3531_v51 = vcombine.low %v1608_v36, %v1620_v33  ;;  %v2033_v47 = vmul.bf16 %v2017_v56, %v1969_v1  ;;  %v1812_v36 = vrot.slane %v5087_v28, %v4578_v29 }
 0x261   :  { %v3700_v59 = vadd.f32 %v3699_v48, %v3698_v10  ;;  %v2008_v18 = vmul.bf16 %v1992_v15, %v5112_v19  ;;  %v1644_v15 = vrot.slane %v1636_v53, %v4578_v29 }
 0x262   :  { %v4022_v62 = vpop.eup %4021  ;;  %v5145_v34 = vadd.bf16 %v3531_v51, %v1411_v32  ;;  %v2018_v32 = vadd.bf16 1065369472, %v2002_v23 }
 0x263   :  { %v1417_v40 = vpack.c.bf16 %v3700_v59, %v3697_v11  ;;  %v2070_v60 = vadd.bf16 1065369472, %v4022_v62  ;;  %v2024_v61 = vadd.bf16 1065369472, %v2008_v18  ;;  %v4024_v3 = vpop.eup %4023  ;;  %v1959_v11 = vmul.bf16 1056980736, %v5089_v16 }
 0x264   :  { %v2063_v10 = vadd.bf16 1065369472, %v4024_v3  ;;  %v1987_v6 = vmul.bf16 1027030327, %v5145_v34  ;;  %v3532_v33 = vcombine.low %v1632_v35, %v1644_v15  ;;  %v1971_v23 = vmul.bf16 1061961548, %v5145_v34 }
 0x265   :  { %v5137_v27 = vadd.bf16 %v3537_v31, %v1417_v40  ;;  %v3701_v46 = vpop.f32.mrb[68].mxu1  ;;  %v2086_v50 = vmul.bf16 %v2070_v60, %v1958_v44  ;;  %v2040_v49 = vmul.bf16 %v2024_v61, %v1976_v25  ;;  %v1951_v31 = vmul.bf16 1056980736, %v5045_v21 }
 0x266   :  { %v3702_v0 = vpop.f32.mrb[69].mxu1  ;;  %v1970_v44 = vmul.bf16 1061961548, %v5122_v57  ;;  %v2003_v58 = vmul.bf16 %v1987_v6, %v5145_v34  ;;  %v5166_v56 = vadd.bf16 %v3532_v33, %v1412_v9 }
 0x267   :  { %v1993_v17 = vmul.bf16 1027030327, %v5137_v27  ;;  %v3703_v54 = vadd.f32 %v3702_v0, %v3701_v46  ;;  %v3704_v13 = vpop.f32.mrb[70].mxu1  ;;  %3721 = vmatprep.subr.bf16.mxu0 %v2086_v50  ;;  %4029 = vtanh.bf16 %v2040_v49  ;;  %v1977_v30 = vmul.bf16 1061961548, %v5137_v27 }
 0x268   :  { %v3705_v7 = vpop.f32.mrb[71].mxu1  ;;  %3722 = vmatpush3.bf16.msra.mxu0 %v2078_v20  ;;  %4031 = vtanh.bf16 %v2033_v47  ;;  %v2079_v40 = vmul.bf16 %v2063_v10, %v1951_v31  ;;  %v2034_v38 = vmul.bf16 %v2018_v32, %v1970_v44  ;;  %v3539_v50 = vcombine.low %v1800_v37, %v1812_v36 }
 0x269   :  { %v3706_v41 = vadd.f32 %v3705_v7, %v3704_v13  ;;  %v2009_v43 = vmul.bf16 %v1993_v17, %v5137_v27  ;;  %v1960_v49 = vmul.bf16 1056980736, %v5112_v19  ;;  %v2019_v3 = vadd.bf16 1065369472, %v2003_v58 }
 0x26a   :  { %v4026_v45 = vpop.eup %4025  ;;  %v1988_v5 = vmul.bf16 1027030327, %v5166_v56  ;;  %v1824_v19 = vrot.slane %v5116_v63, %v4578_v29  ;;  %v1836_v13 = vrot.slane %v5126_v42, %v4578_v29  ;;  %v1953_v37 = vmul.bf16 1056980736, %v5097_v12 }
 0x26b   :  { %v1418_v8 = vpack.c.bf16 %v3706_v41, %v3703_v54  ;;  %v2071_v48 = vadd.bf16 1065369472, %v4026_v45  ;;  %v2025_v22 = vadd.bf16 1065369472, %v2009_v43  ;;  %v4028_v60 = vpop.eup %4027  ;;  %v2035_v15 = vmul.bf16 %v2019_v3, %v1971_v23  ;;  %v3944_v23 = vld [vmem:[%s5485_s5 + $0x34] ss:$8 sps:$4 sm:$0xff]  }
 0x26c   :  { %v2064_v51 = vadd.bf16 1065369472, %v4028_v60  ;;  %v2004_v45 = vmul.bf16 %v1988_v5, %v5166_v56  ;;  %v3540_v10 = vcombine.low %v1824_v19, %v1836_v13  ;;  %v1972_v36 = vmul.bf16 1061961548, %v5166_v56  ;;  %v3940_v19 = vld [vmem:[%s5485_s5 + $0x10] ss:$8 sps:$4 sm:$0xff]  }
 0x26d   :  { %v5156_v59 = vadd.bf16 %v3538_v55, %v1418_v8  ;;  %v3707_v18 = vpop.f32.mrb[72].mxu1  ;;  %v2087_v62 = vmul.bf16 %v2071_v48, %v1959_v11  ;;  %v2041_v16 = vmul.bf16 %v2025_v22, %v1977_v30  ;;  %v1961_v8 = vmul.bf16 1056980736, %v5137_v27  ;;  %v3943_v13 = vld [vmem:[%s5485_s5 + $0x20] ss:$8 sps:$4 sm:$0xff]  }
 0x26e   :  { %v3708_v39 = vpop.f32.mrb[73].mxu1  ;;  %v2080_v47 = vmul.bf16 %v2064_v51, %v1952_v2  ;;  %v2020_v31 = vadd.bf16 1065369472, %v2004_v45  ;;  %v3955_v45 = vld [vmem:[%s5485_s5 + $0x60] ss:$8 sps:$4 sm:$0xff]  }
 0x26f   :  { %v1994_v21 = vmul.bf16 1027030327, %v5156_v59  ;;  %v3709_v25 = vadd.f32 %v3708_v39, %v3707_v18  ;;  %v3710_v61 = vpop.f32.mrb[74].mxu1  ;;  %3723 = vmatprep.subr.bf16.mxu0 %v2087_v62  ;;  %4033 = vtanh.bf16 %v2041_v16  ;;  %v1978_v0 = vmul.bf16 1061961548, %v5156_v59 }
 0x270   :  { %v3711_v28 = vpop.f32.mrb[75].mxu1  ;;  %3724 = vmatpush3.bf16.msra.mxu0 %v2079_v40  ;;  %4035 = vtanh.bf16 %v2034_v38  ;;  %v2036_v27 = vmul.bf16 %v2020_v31, %v1972_v36  ;;  %v3974_v31 = vld [vmem:[%s5485_s5 + $0xd4] ss:$8 sps:$4 sm:$0xff]   ;;  %v3982_v36 = vld [vmem:[%s5485_s5 + $0xf0] ss:$8 sps:$4 sm:$0xff]  }
 0x271   :  { %v3712_v4 = vadd.f32 %v3711_v28, %v3710_v61  ;;  %v2010_v14 = vmul.bf16 %v1994_v21, %v5156_v59  ;;  %v1962_v21 = vmul.bf16 1056980736, %v5156_v59  ;;  %v1954_v28 = vmul.bf16 1056980736, %v5122_v57 }
 0x272   :  { %v4030_v46 = vpop.eup %4029  ;;  %v1955_v59 = vmul.bf16 1056980736, %v5145_v34  ;;  %v3938_v34 = vld [vmem:[%s5485_s5 + $0x14] ss:$8 sps:$4 sm:$0xff]  }
 0x273   :  { %v1419_v26 = vpack.c.bf16 %v3712_v4, %v3709_v25  ;;  %v2072_v1 = vadd.bf16 1065369472, %v4030_v46  ;;  %v2026_v20 = vadd.bf16 1065369472, %v2010_v14  ;;  %v4032_v55 = vpop.eup %4031 }
 0x274   :  { %v2065_v48 = vadd.bf16 1065369472, %v4032_v55  ;;  %v3949_v55 = vld [vmem:[%s5485_s5 + $0x40] ss:$8 sps:$4 sm:$0xff]  }
 0x275   :  { %v5173_v9 = vadd.bf16 %v3539_v50, %v1419_v26  ;;  %v3713_v53 = vpop.f32.mrb[76].mxu1  ;;  %v2088_v17 = vmul.bf16 %v2072_v1, %v1960_v49  ;;  %v2042_v54 = vmul.bf16 %v2026_v20, %v1978_v0 }
 0x276   :  { %v3714_v7 = vpop.f32.mrb[77].mxu1  ;;  %v2081_v33 = vmul.bf16 %v2065_v48, %v1953_v37  ;;  %v3967_v48 = vld [vmem:[%s5485_s5 + $0xa0] ss:$8 sps:$4 sm:$0xff]   ;;  %v3976_v37 = vld [vmem:[%s5485_s5 + $0xd0] ss:$8 sps:$4 sm:$0xff]  }
 0x277   :  { %v1995_v41 = vmul.bf16 1027030327, %v5173_v9  ;;  %v3715_v52 = vadd.f32 %v3714_v7, %v3713_v53  ;;  %v3716_v43 = vpop.f32.mrb[78].mxu1  ;;  %3725 = vmatprep.subr.bf16.mxu0 %v2088_v17  ;;  %4037 = vtanh.bf16 %v2042_v54  ;;  %v1979_v32 = vmul.bf16 1061961548, %v5173_v9 }
 0x278   :  { %v3717_v35 = vpop.f32.mrb[79].mxu1  ;;  %3726 = vmatpush3.bf16.msra.mxu0 %v2080_v47  ;;  %4039 = vtanh.bf16 %v2035_v15  ;;  %v1963_v51 = vmul.bf16 1056980736, %v5173_v9  ;;  %v1956_v53 = vmul.bf16 1056980736, %v5166_v56 }
 0x279   :  { %v3718_v63 = vadd.f32 %v3717_v35, %v3716_v43  ;;  %v2011_v11 = vmul.bf16 %v1995_v41, %v5173_v9  ;;  %v3935_v9 = vld [vmem:[%s5485_s5] ss:$8 sps:$4 sm:$0xff]   ;;  %v3941_v56 = vld [vmem:[%s5485_s5 + $0x24] ss:$8 sps:$4 sm:$0xff]   ;;  %v3946_v7 = vld [vmem:[%s5485_s5 + $0x30] ss:$8 sps:$4 sm:$0xff]  }
 0x27a   :  { %v4034_v42 = vpop.eup %4033  ;;  %v3947_v47 = vld [vmem:[%s5485_s5 + $0x44] ss:$8 sps:$4 sm:$0xff]   ;;  %v3950_v41 = vld [vmem:[%s5485_s5 + $0x54] ss:$8 sps:$4 sm:$0xff]   ;;  %v3958_v15 = vld [vmem:[%s5485_s5 + $0x70] ss:$8 sps:$4 sm:$0xff]  }
 0x27b   :  { %v1420_v30 = vpack.c.bf16 %v3718_v63, %v3715_v52  ;;  %v2073_v22 = vadd.bf16 1065369472, %v4034_v42  ;;  %v2027_v6 = vadd.bf16 1065369472, %v2011_v11  ;;  %v4036_v44 = vpop.eup %4035  ;;  %v3952_v52 = vld [vmem:[%s5485_s5 + $0x50] ss:$8 sps:$4 sm:$0xff]  }
 0x27c   :  { %v2066_v25 = vadd.bf16 1065369472, %v4036_v44  ;;  %v3953_v43 = vld [vmem:[%s5485_s5 + $0x64] ss:$8 sps:$4 sm:$0xff]   ;;  %v3956_v35 = vld [vmem:[%s5485_s5 + $0x74] ss:$8 sps:$4 sm:$0xff]   ;;  %v2509_v44 = vpop.permute.xlu1 %2508 }
 0x27d   :  { %v1948_v18 = vadd.bf16 %v3540_v10, %v1420_v30  ;;  %v2089_v62 = vmul.bf16 %v2073_v22, %v1961_v8  ;;  %v2043_v16 = vmul.bf16 %v2027_v6, %v1979_v32  ;;  %v3959_v63 = vld [vmem:[%s5485_s5 + $0x84] ss:$8 sps:$4 sm:$0xff]   ;;  %v3961_v11 = vld [vmem:[%s5485_s5 + $0x80] ss:$8 sps:$4 sm:$0xff]   ;;  %v3962_v42 = vld [vmem:[%s5485_s5 + $0x94] ss:$8 sps:$4 sm:$0xff]  }
 0x27e   :  { %v2082_v14 = vmul.bf16 %v2066_v25, %v1954_v28  ;;  %v3964_v10 = vld [vmem:[%s5485_s5 + $0x90] ss:$8 sps:$4 sm:$0xff]   ;;  %v3965_v8 = vld [vmem:[%s5485_s5 + $0xa4] ss:$8 sps:$4 sm:$0xff]   ;;  %v3968_v30 = vld [vmem:[%s5485_s5 + $0xb4] ss:$8 sps:$4 sm:$0xff]  }
 0x27f   :  { %v1996_v39 = vmul.bf16 1027030327, %v1948_v18  ;;  %3727 = vmatprep.subr.bf16.mxu0 %v2089_v62  ;;  %4041 = vtanh.bf16 %v2043_v16  ;;  %v1980_v12 = vmul.bf16 1061961548, %v1948_v18  ;;  %v1964_v5 = vmul.bf16 1056980736, %v1948_v18 }
 0x280   :  { %3728 = vmatpush3.bf16.msra.mxu0 %v2081_v33  ;;  %4043 = vtanh.bf16 %v2036_v27  ;;  %v3970_v22 = vld [vmem:[%s5485_s5 + $0xb0] ss:$8 sps:$4 sm:$0xff]   ;;  %v3971_v32 = vld [vmem:[%s5485_s5 + $0xc4] ss:$8 sps:$4 sm:$0xff]   ;;  %v3973_v6 = vld [vmem:[%s5485_s5 + $0xc0] ss:$8 sps:$4 sm:$0xff]   ;;  %v2497_v33 = vpop.permute.xlu0 %2496  ;;  %v2533_v27 = vpop.permute.xlu1 %2532 }
 0x281   :  { %v2012_v40 = vmul.bf16 %v1996_v39, %v1948_v18  ;;  %v3977_v18 = vld [vmem:[%s5485_s5 + $0xe4] ss:$8 sps:$4 sm:$0xff]   ;;  %v3979_v62 = vld [vmem:[%s5485_s5 + $0xe0] ss:$8 sps:$4 sm:$0xff]   ;;  %v3980_v16 = vld [vmem:[%s5485_s5 + $0xf4] ss:$8 sps:$4 sm:$0xff]  }
 0x282   :  { %v4038_v60 = vpop.eup %4037 }
 0x283   :  { %v2074_v61 = vadd.bf16 1065369472, %v4038_v60  ;;  %v2028_v58 = vadd.bf16 1065369472, %v2012_v40  ;;  %v4040_v46 = vpop.eup %4039 }
 0x284   :  { %v2067_v49 = vadd.bf16 1065369472, %v4040_v46  ;;  %v2521_v39 = vpop.permute.xlu0 %2520  ;;  %v2557_v60 = vpop.permute.xlu1 %2556 }
 0x285   :  { %v2090_v38 = vmul.bf16 %v2074_v61, %v1962_v21  ;;  %v2044_v4 = vmul.bf16 %v2028_v58, %v1980_v12 }
 0x286   :  { %v2083_v0 = vmul.bf16 %v2067_v49, %v1955_v59  ;;  %v2517_v59 = vrot.slane %v2509_v44, %v4578_v29 }
 0x287   :  { %3729 = vmatprep.subr.bf16.mxu0 %v2090_v38  ;;  %4045 = vtanh.bf16 %v2044_v4 }
 0x288   :  { %3730 = vmatpush3.bf16.msra.mxu0 %v2082_v14  ;;  %v2545_v40 = vpop.permute.xlu0 %2544  ;;  %v5287_v25 = vpop.permute.xlu1 %2580 }
 0x28a   :  { %v4042_v50 = vpop.eup %4041 }
 0x28b   :  { %v2075_v26 = vadd.bf16 1065369472, %v4042_v50  ;;  %v4044_v20 = vpop.eup %4043 }
 0x28c   :  { %v2068_v3 = vadd.bf16 1065369472, %v4044_v20  ;;  %v5285_v21 = vpop.permute.xlu0 %2568  ;;  %v5291_v12 = vpop.permute.xlu1 %2604 }
 0x28d   :  { %v2091_v1 = vmul.bf16 %v2075_v26, %v1963_v51  ;;  %v2505_v26 = vrot.slane %v2497_v33, %v4578_v29 }
 0x28e   :  { %v2084_v54 = vmul.bf16 %v2068_v3, %v1956_v53 }
 0x28f   :  { %3731 = vmatprep.subr.bf16.mxu0 %v2091_v1 }
 0x290   :  { %3732 = vmatpush3.bf16.msra.mxu0 %v2083_v0  ;;  %v5289_v61 = vpop.permute.xlu0 %2592  ;;  %v5295_v28 = vpop.permute.xlu1 %2628 }
 0x292   :  { %v4046_v57 = vpop.eup %4045 }
 0x293   :  { %v2076_v2 = vadd.bf16 1065369472, %v4046_v57 }
 0x294   :  { %v5293_v58 = vpop.permute.xlu0 %2616  ;;  %v5299_v4 = vpop.permute.xlu1 %2652 }
 0x295   :  { %v2092_v17 = vmul.bf16 %v2076_v2, %v1964_v5  ;;  %v3573_v2 = vcombine.low %v2505_v26, %v2517_v59 }
 0x297   :  { %3733 = vmatprep.subr.bf16.mxu0 %v2092_v17 }
 0x298   :  { %3734 = vmatpush3.bf16.msra.mxu0 %v2084_v54  ;;  %v5297_v38 = vpop.permute.xlu0 %2640  ;;  %v5303_v46 = vpop.permute.xlu1 %2676 }
 0x29b   :  { %2318 = vmatmul.mubr.bf16.vlgmr.msra.gmra.mrb[16].mxu0 %v3935_v9 }
 0x29c   :  { %2325 = vmatprep.mubr.bf16.mxu0 %v3938_v34  ;;  %v5301_v14 = vpop.permute.xlu0 %2664  ;;  %v5309_v1 = vpop.permute.xlu1 %2700 }
 0x2a0   :  { %v5305_v50 = vpop.permute.xlu0 %2688  ;;  %v5313_v17 = vpop.permute.xlu1 %2724 }
 0x2a3   :  { %2326 = vmatmul.mubr.bf16.gmra.mrb[20].mxu0 %v3940_v19 }
 0x2a4   :  { %2333 = vmatprep.mubr.bf16.mxu0 %v3941_v56  ;;  %v5311_v3 = vpop.permute.xlu0 %2712 }
 0x2a8   :  { %v5315_v19 = vpop.permute.xlu0 %2736 }
 0x2ab   :  { %2334 = vmatmul.mubr.bf16.gmra.mrb[24].mxu0 %v3943_v13 }
 0x2ac   :  { %2341 = vmatprep.mubr.bf16.mxu0 %v3944_v23  ;;  %v2529_v23 = vrot.slane %v2521_v39, %v4578_v29 }
 0x2b3   :  { %2342 = vmatmul.mubr.bf16.gmra.mrb[28].mxu0 %v3946_v7  ;;  %v2541_v7 = vrot.slane %v2533_v27, %v4578_v29 }
 0x2b4   :  { %2349 = vmatprep.mubr.bf16.mxu0 %v3947_v47 }
 0x2bb   :  { %2350 = vmatmul.mubr.bf16.gmra.mrb[32].mxu0 %v3949_v55 }
 0x2bc   :  { %2357 = vmatprep.mubr.bf16.mxu0 %v3950_v41 }
 0x2c3   :  { %2358 = vmatmul.mubr.bf16.gmra.mrb[36].mxu0 %v3952_v52 }
 0x2c4   :  { %2365 = vmatprep.mubr.bf16.mxu0 %v3953_v43  ;;  %v5319_v43 = vpop.permute.xlu1 %2748 }
 0x2cb   :  { %2366 = vmatmul.mubr.bf16.gmra.mrb[40].mxu0 %v3955_v45 }
 0x2cc   :  { %2373 = vmatprep.mubr.bf16.mxu0 %v3956_v35 }
 0x2d3   :  { %2374 = vmatmul.mubr.bf16.gmra.mrb[44].mxu0 %v3958_v15  ;;  %v3574_v15 = vcombine.low %v2529_v23, %v2541_v7 }
 0x2d4   :  { %2381 = vmatprep.mubr.bf16.mxu0 %v3959_v63 }
 0x2db   :  { %2382 = vmatmul.mubr.bf16.gmra.mrb[48].mxu0 %v3961_v11  ;;  %v5321_v11 = vpop.permute.xlu0 %2760 }
 0x2dc   :  { %2389 = vmatprep.mubr.bf16.mxu0 %v3962_v42 }
 0x2e3   :  { %2390 = vmatmul.mubr.bf16.gmra.mrb[52].mxu0 %v3964_v10 }
 0x2e4   :  { %2397 = vmatprep.mubr.bf16.mxu0 %v3965_v8 }
 0x2eb   :  { %2398 = vmatmul.mubr.bf16.gmra.mrb[56].mxu0 %v3967_v48 }
 0x2ec   :  { %2405 = vmatprep.mubr.bf16.mxu0 %v3968_v30 }
 0x2f3   :  { %2406 = vmatmul.mubr.bf16.gmra.mrb[60].mxu0 %v3970_v22 }
 0x2f4   :  { %2413 = vmatprep.mubr.bf16.mxu0 %v3971_v32  ;;  %v2553_v32 = vrot.slane %v2545_v40, %v4578_v29 }
 0x2fb   :  { %2414 = vmatmul.mubr.bf16.gmra.mrb[64].mxu0 %v3973_v6  ;;  %v2565_v6 = vrot.slane %v2557_v60, %v4578_v29 }
 0x2fc   :  { %2421 = vmatprep.mubr.bf16.mxu0 %v3974_v31 }
 0x2fd   :  { %v3575_v33 = vcombine.low %v2553_v32, %v2565_v6 }
 0x303   :  { %2422 = vmatmul.mubr.bf16.gmra.mrb[68].mxu0 %v3976_v37  ;;  %v5328_v37 = vpop.permute.xlu1 %2772 }
 0x304   :  { %2429 = vmatprep.mubr.bf16.mxu0 %v3977_v18 }
 0x307   :  { %v5336_v26 = vpop.permute.xlu1 %2796 }
 0x30b   :  { %2430 = vmatmul.mubr.bf16.gmra.mrb[72].mxu0 %v3979_v62 }
 0x30c   :  { %2437 = vmatprep.mubr.bf16.mxu0 %v3980_v16 }
 0x313   :  { %2438 = vmatmul.mubr.bf16.gmra.mrb[76].mxu0 %v3982_v36  ;;  %v5331_v36 = vpop.permute.xlu0 %2784 }
 0x36e   :  { %v3735_v49 = vpop.f32.mrb[16].mxu0 }
 0x36f   :  { %v3736_v51 = vpop.f32.mrb[17].mxu0 }
 0x370   :  { %v3737_v0 = vadd.f32 %v3736_v51, %v3735_v49  ;;  %v3738_v20 = vpop.f32.mrb[18].mxu0 }
 0x371   :  { %v3739_v57 = vpop.f32.mrb[19].mxu0 }
 0x372   :  { %v3740_v5 = vadd.f32 %v3739_v57, %v3738_v20  ;;  %v2577_v20 = vrot.slane %v5285_v21, %v4578_v29  ;;  %v2589_v57 = vrot.slane %v5287_v25, %v4578_v29 }
 0x374   :  { %v2446_v53 = vpack.c.bf16 %v3740_v5, %v3737_v0  ;;  %v3576_v7 = vcombine.low %v2577_v20, %v2589_v57 }
 0x376   :  { %v2974_v54 = vadd.bf16 %v3573_v2, %v2446_v53  ;;  %v3741_v9 = vpop.f32.mrb[20].mxu0  ;;  %v5343_v2 = vpop.permute.xlu0 %2808 }
 0x377   :  { %v3742_v34 = vpop.f32.mrb[21].mxu0 }
 0x378   :  { %v3022_v56 = vmul.bf16 1027030327, %v2974_v54  ;;  %v3743_v13 = vadd.f32 %v3742_v34, %v3741_v9  ;;  %v3744_v47 = vpop.f32.mrb[22].mxu0  ;;  %v3006_v45 = vmul.bf16 1061961548, %v2974_v54 }
 0x379   :  { %v3745_v41 = vpop.f32.mrb[23].mxu0 }
 0x37a   :  { %v3038_v55 = vmul.bf16 %v3022_v56, %v2974_v54  ;;  %v3746_v52 = vadd.f32 %v3745_v41, %v3744_v47  ;;  %v5347_v41 = vpop.permute.xlu1 %2820 }
 0x37c   :  { %v3054_v35 = vadd.bf16 1065369472, %v3038_v55  ;;  %v2447_v63 = vpack.c.bf16 %v3746_v52, %v3743_v13  ;;  %v2990_v13 = vmul.bf16 1056980736, %v2974_v54  ;;  %v2613_v54 = vrot.slane %v5291_v12, %v4578_v29 }
 0x37e   :  { %v3070_v42 = vmul.bf16 %v3054_v35, %v3006_v45  ;;  %v3747_v10 = vpop.f32.mrb[24].mxu0  ;;  %v5323_v8 = vadd.bf16 %v3574_v15, %v2447_v63  ;;  %v2601_v63 = vrot.slane %v5289_v61, %v4578_v29 }
 0x37f   :  { %v3748_v48 = vpop.f32.mrb[25].mxu0 }
 0x380   :  { %4047 = vtanh.bf16 %v3070_v42  ;;  %v3749_v30 = vadd.f32 %v3748_v48, %v3747_v10  ;;  %v3750_v22 = vpop.f32.mrb[26].mxu0  ;;  %v3023_v31 = vmul.bf16 1027030327, %v5323_v8  ;;  %v3007_v44 = vmul.bf16 1061961548, %v5323_v8  ;;  %v5355_v42 = vpop.permute.xlu0 %2832 }
 0x381   :  { %v3751_v18 = vpop.f32.mrb[27].mxu0  ;;  %v2991_v61 = vmul.bf16 1056980736, %v5323_v8 }
 0x382   :  { %v3039_v62 = vmul.bf16 %v3023_v31, %v5323_v8  ;;  %v3752_v16 = vadd.f32 %v3751_v18, %v3750_v22  ;;  %v2637_v8 = vrot.slane %v5295_v28, %v4578_v29 }
 0x384   :  { %v3055_v39 = vadd.bf16 1065369472, %v3039_v62  ;;  %v2448_v27 = vpack.c.bf16 %v3752_v16, %v3749_v30  ;;  %v3577_v16 = vcombine.low %v2601_v63, %v2613_v54 }
 0x386   :  { %v3753_v49 = vpop.f32.mrb[28].mxu0  ;;  %v3071_v51 = vmul.bf16 %v3055_v39, %v3007_v44  ;;  %v5334_v40 = vadd.bf16 %v3575_v33, %v2448_v27  ;;  %v3201_v33 = vpop.permute.xlu1 %3200 }
 0x387   :  { %v3754_v60 = vpop.f32.mrb[29].mxu0 }
 0x388   :  { %v3755_v59 = vadd.f32 %v3754_v60, %v3753_v49  ;;  %v3756_v0 = vpop.f32.mrb[30].mxu0  ;;  %4049 = vtanh.bf16 %v3071_v51  ;;  %v3024_v5 = vmul.bf16 1027030327, %v5334_v40  ;;  %v3008_v47 = vmul.bf16 1061961548, %v5334_v40  ;;  %v3206_v49 = vpop.permute.xlu0 %3205 }
 0x389   :  { %v3757_v53 = vpop.f32.mrb[31].mxu0 }
 0x38a   :  { %v3040_v34 = vmul.bf16 %v3024_v5, %v5334_v40  ;;  %v3758_v56 = vadd.f32 %v3757_v53, %v3756_v0  ;;  %v2625_v53 = vrot.slane %v5293_v58, %v4578_v29 }
 0x38b   :  { %v4048_v9 = vpop.eup %4047 }
 0x38c   :  { %v3102_v23 = vadd.bf16 1065369472, %v4048_v9  ;;  %v3056_v55 = vadd.bf16 1065369472, %v3040_v34  ;;  %v2449_v21 = vpack.c.bf16 %v3758_v56, %v3755_v59 }
 0x38e   :  { %v3118_v25 = vmul.bf16 %v3102_v23, %v2990_v13  ;;  %v3759_v52 = vpop.f32.mrb[32].mxu0  ;;  %v3072_v45 = vmul.bf16 %v3056_v55, %v3008_v47  ;;  %v5349_v35 = vadd.bf16 %v3576_v7, %v2449_v21  ;;  %v3211_v7 = vpop.permute.xlu1 %3210 }
 0x38f   :  { %v3760_v15 = vpop.f32.mrb[33].mxu0 }
 0x390   :  { %v3761_v10 = vadd.f32 %v3760_v15, %v3759_v52  ;;  %v3762_v48 = vpop.f32.mrb[34].mxu0  ;;  %4051 = vtanh.bf16 %v3072_v45  ;;  %v3025_v30 = vmul.bf16 1027030327, %v5349_v35  ;;  %v3134_v22 = vunpack.c.l.bf16 %v3118_v25  ;;  %v3216_v15 = vpop.permute.xlu0 %3215 }
 0x391   :  { %v3763_v32 = vpop.f32.mrb[35].mxu0  ;;  %v3135_v6 = vunpack.c.h.bf16 %v3118_v25  ;;  %v3009_v12 = vmul.bf16 1061961548, %v5349_v35  ;;  %v3578_v45 = vcombine.low %v2625_v53, %v2637_v8  ;;  %v2993_v53 = vmul.bf16 1056980736, %v5349_v35 }
 0x392   :  { %v3041_v31 = vmul.bf16 %v3025_v30, %v5349_v35  ;;  %v3764_v18 = vadd.f32 %v3763_v32, %v3762_v48  ;;  %v3358_v51 = vmul.f32 %v3201_v33, %v3134_v22  ;;  %v2661_v33 = vrot.slane %v5299_v4, %v4578_v29 }
 0x393   :  { %v4050_v62 = vpop.eup %4049  ;;  %v3359_v59 = vmul.f32 %v3206_v49, %v3135_v6  ;;  %v3221_v49 = vpop.permute.xlu1 %3220  ;;  %v2685_v35 = vrot.slane %v5303_v46, %v4578_v29 }
 0x394   :  { %v3103_v44 = vadd.bf16 1065369472, %v4050_v62  ;;  %v3057_v39 = vadd.bf16 1065369472, %v3041_v31  ;;  %v2450_v27 = vpack.c.bf16 %v3764_v18, %v3761_v10  ;;  %v2992_v10 = vmul.bf16 1056980736, %v5334_v40 }
 0x395   :  { %v3390_v21 = vadd.f32 %v3359_v59, %v3358_v51 }
 0x396   :  { %v3765_v60 = vpop.f32.mrb[36].mxu0  ;;  %v3119_v0 = vmul.bf16 %v3103_v44, %v2991_v61  ;;  %v3073_v20 = vmul.bf16 %v3057_v39, %v3009_v12  ;;  %v5361_v57 = vadd.bf16 %v3577_v16, %v2450_v27  ;;  %v2649_v16 = vrot.slane %v5297_v38, %v4578_v29  ;;  %v3226_v38 = vpop.permute.xlu0 %3225 }
 0x397   :  { %v3766_v5 = vpop.f32.mrb[37].mxu0 }
 0x398   :  { %v3767_v9 = vadd.f32 %v3766_v5, %v3765_v60  ;;  %v3768_v34 = vpop.f32.mrb[38].mxu0  ;;  %v3136_v56 = vunpack.c.l.bf16 %v3119_v0  ;;  %v3137_v13 = vunpack.c.h.bf16 %v3119_v0  ;;  %4053 = vtanh.bf16 %v3073_v20 }
 0x399   :  { %v3769_v23 = vpop.f32.mrb[39].mxu0  ;;  %v3026_v47 = vmul.bf16 1027030327, %v5361_v57  ;;  %v3010_v30 = vmul.bf16 1061961548, %v5361_v57  ;;  %v3579_v5 = vcombine.low %v2649_v16, %v2661_v33 }
 0x39a   :  { %v3770_v55 = vadd.f32 %v3769_v23, %v3768_v34  ;;  %v3360_v25 = vmul.f32 %v3211_v7, %v3136_v56  ;;  %v3361_v54 = vmul.f32 %v3216_v15, %v3137_v13  ;;  %v2994_v46 = vmul.bf16 1056980736, %v5361_v57 }
 0x39b   :  { %v4052_v52 = vpop.eup %4051  ;;  %v3042_v58 = vmul.bf16 %v3026_v47, %v5361_v57 }
 0x39c   :  { %v2451_v63 = vpack.c.bf16 %v3770_v55, %v3767_v9  ;;  %v3391_v28 = vadd.f32 %v3390_v21, %v3360_v25  ;;  %v3104_v48 = vadd.bf16 1065369472, %v4052_v52  ;;  %v2673_v52 = vrot.slane %v5301_v14, %v4578_v29 }
 0x39d   :  { %v3058_v22 = vadd.bf16 1065369472, %v3042_v58 }
 0x39e   :  { %v5371_v32 = vadd.bf16 %v3578_v45, %v2451_v63  ;;  %v3771_v6 = vpop.f32.mrb[40].mxu0  ;;  %v3392_v31 = vadd.f32 %v3391_v28, %v3361_v54  ;;  %v3120_v18 = vmul.bf16 %v3104_v48, %v2992_v10  ;;  %v3231_v45 = vpop.permute.xlu1 %3230 }
 0x39f   :  { %v3772_v62 = vpop.f32.mrb[41].mxu0  ;;  %v3074_v61 = vmul.bf16 %v3058_v22, %v3010_v30  ;;  %v3580_v22 = vcombine.low %v2673_v52, %v2685_v35 }
 0x3a0   :  { %v3027_v44 = vmul.bf16 1027030327, %v5371_v32  ;;  %v3138_v40 = vunpack.c.l.bf16 %v3120_v18  ;;  %v3139_v12 = vunpack.c.h.bf16 %v3120_v18  ;;  %v3773_v39 = vadd.f32 %v3772_v62, %v3771_v6  ;;  %v3774_v27 = vpop.f32.mrb[42].mxu0  ;;  %v3236_v6 = vpop.permute.xlu0 %3235 }
 0x3a1   :  { %4055 = vtanh.bf16 %v3074_v61  ;;  %v3775_v60 = vpop.f32.mrb[43].mxu0  ;;  %v3011_v4 = vmul.bf16 1061961548, %v5371_v32 }
 0x3a2   :  { %v3043_v51 = vmul.bf16 %v3027_v44, %v5371_v32  ;;  %v3362_v59 = vmul.f32 %v3221_v49, %v3138_v40  ;;  %v3776_v0 = vadd.f32 %v3775_v60, %v3774_v27  ;;  %v3363_v9 = vmul.f32 %v3226_v38, %v3139_v12  ;;  %v3241_v61 = vpop.permute.xlu1 %3240 }
 0x3a3   :  { %v4054_v20 = vpop.eup %4053  ;;  %v2697_v27 = vrot.slane %v5305_v50, %v4578_v29  ;;  %v2709_v49 = vrot.slane %v5309_v1, %v4578_v29 }
 0x3a4   :  { %v3059_v8 = vadd.bf16 1065369472, %v3043_v51  ;;  %v3393_v34 = vadd.f32 %v3392_v31, %v3362_v59  ;;  %v3105_v56 = vadd.bf16 1065369472, %v4054_v20  ;;  %v2452_v13 = vpack.c.bf16 %v3776_v0, %v3773_v39 }
 0x3a6   :  { %v3075_v23 = vmul.bf16 %v3059_v8, %v3011_v4  ;;  %v3777_v7 = vpop.f32.mrb[44].mxu0  ;;  %v3394_v47 = vadd.f32 %v3393_v34, %v3363_v9  ;;  %v3121_v55 = vmul.bf16 %v3105_v56, %v2993_v53  ;;  %v5381_v21 = vadd.bf16 %v3579_v5, %v2452_v13  ;;  %v3246_v53 = vpop.permute.xlu0 %3245 }
 0x3a7   :  { %v3778_v25 = vpop.f32.mrb[45].mxu0  ;;  %v3581_v56 = vcombine.low %v2697_v27, %v2709_v49  ;;  %v3251_v13 = vpop.permute.xlu1 %3250 }
 0x3a8   :  { %4057 = vtanh.bf16 %v3075_v23  ;;  %v3779_v15 = vadd.f32 %v3778_v25, %v3777_v7  ;;  %v3780_v58 = vpop.f32.mrb[46].mxu0  ;;  %v3140_v63 = vunpack.c.l.bf16 %v3121_v55  ;;  %v3141_v54 = vunpack.c.h.bf16 %v3121_v55 }
 0x3a9   :  { %v3781_v28 = vpop.f32.mrb[47].mxu0  ;;  %v3028_v10 = vmul.bf16 1027030327, %v5381_v21  ;;  %v3012_v33 = vmul.bf16 1061961548, %v5381_v21 }
 0x3aa   :  { %v3782_v48 = vadd.f32 %v3781_v28, %v3780_v58  ;;  %v3364_v30 = vmul.f32 %v3231_v45, %v3140_v63  ;;  %v3365_v62 = vmul.f32 %v3236_v6, %v3141_v54  ;;  %v2995_v23 = vmul.bf16 1056980736, %v5371_v32  ;;  %v3256_v32 = vpop.permute.xlu0 %3255 }
 0x3ab   :  { %v3044_v31 = vmul.bf16 %v3028_v10, %v5381_v21  ;;  %v2721_v63 = vrot.slane %v5311_v3, %v4578_v29  ;;  %v2733_v10 = vrot.slane %v5313_v17, %v4578_v29 }
 0x3ac   :  { %v2453_v18 = vpack.c.bf16 %v3782_v48, %v3779_v15  ;;  %v4056_v14 = vpop.eup %4055  ;;  %v3395_v16 = vadd.f32 %v3394_v47, %v3364_v30 }
 0x3ad   :  { %v3106_v44 = vadd.bf16 1065369472, %v4056_v14  ;;  %v3060_v40 = vadd.bf16 1065369472, %v3044_v31 }
 0x3ae   :  { %v5391_v12 = vadd.bf16 %v3580_v22, %v2453_v18  ;;  %v3783_v39 = vpop.f32.mrb[48].mxu0  ;;  %v3396_v51 = vadd.f32 %v3395_v16, %v3365_v62  ;;  %v5408_v62 = vpop.permute.xlu1 %2844 }
 0x3af   :  { %v3784_v60 = vpop.f32.mrb[49].mxu0  ;;  %v3122_v59 = vmul.bf16 %v3106_v44, %v2994_v46  ;;  %v3076_v0 = vmul.bf16 %v3060_v40, %v3012_v33  ;;  %v3582_v33 = vcombine.low %v2721_v63, %v2733_v10  ;;  %v3261_v49 = vpop.permute.xlu0 %3260 }
 0x3b0   :  { %v3786_v20 = vpop.f32.mrb[50].mxu0  ;;  %v3029_v57 = vmul.bf16 1027030327, %v5391_v12  ;;  %v3785_v5 = vadd.f32 %v3784_v60, %v3783_v39  ;;  %v3013_v55 = vmul.bf16 1061961548, %v5391_v12 }
 0x3b1   :  { %v3787_v38 = vpop.f32.mrb[51].mxu0  ;;  %v3142_v4 = vunpack.c.l.bf16 %v3122_v59  ;;  %v3143_v8 = vunpack.c.h.bf16 %v3122_v59  ;;  %4059 = vtanh.bf16 %v3076_v0  ;;  %v2996_v60 = vmul.bf16 1056980736, %v5381_v21 }
 0x3b2   :  { %v3788_v9 = vadd.f32 %v3787_v38, %v3786_v20  ;;  %v3045_v50 = vmul.bf16 %v3029_v57, %v5391_v12  ;;  %v3266_v38 = vpop.permute.xlu1 %3265 }
 0x3b3   :  { %v4058_v34 = vpop.eup %4057  ;;  %v3366_v1 = vmul.f32 %v3241_v61, %v3142_v4  ;;  %v3367_v52 = vmul.f32 %v3246_v53, %v3143_v8  ;;  %v2745_v8 = vrot.slane %v5315_v19, %v4578_v29 }
 0x3b4   :  { %v3107_v7 = vadd.bf16 1065369472, %v4058_v34  ;;  %v2454_v47 = vpack.c.bf16 %v3788_v9, %v3785_v5  ;;  %v3061_v25 = vadd.bf16 1065369472, %v3045_v50  ;;  %v2757_v9 = vrot.slane %v5319_v43, %v4578_v29 }
 0x3b5   :  { %v3397_v35 = vadd.f32 %v3396_v51, %v3366_v1 }
 0x3b6   :  { %v3123_v45 = vmul.bf16 %v3107_v7, %v2995_v23  ;;  %v5401_v15 = vadd.bf16 %v3581_v56, %v2454_v47  ;;  %v3789_v58 = vpop.f32.mrb[52].mxu0  ;;  %v3077_v54 = vmul.bf16 %v3061_v25, %v3013_v55  ;;  %v5421_v47 = vpop.permute.xlu0 %2856  ;;  %v3583_v19 = vcombine.low %v2745_v8, %v2757_v9 }
 0x3b7   :  { %v3790_v28 = vpop.f32.mrb[53].mxu0  ;;  %v3398_v48 = vadd.f32 %v3397_v35, %v3367_v52  ;;  %v2997_v35 = vmul.bf16 1056980736, %v5391_v12  ;;  %v2793_v8 = vrot.slane %v5331_v36, %v4578_v29 }
 0x3b8   :  { %v3144_v30 = vunpack.c.l.bf16 %v3123_v45  ;;  %v3145_v22 = vunpack.c.h.bf16 %v3123_v45  ;;  %v3792_v6 = vpop.f32.mrb[54].mxu0  ;;  %4061 = vtanh.bf16 %v3077_v54  ;;  %v3030_v31 = vmul.bf16 1027030327, %v5401_v15 }
 0x3b9   :  { %v3791_v18 = vadd.f32 %v3790_v28, %v3789_v58  ;;  %v3793_v14 = vpop.f32.mrb[55].mxu0  ;;  %v3014_v39 = vmul.bf16 1061961548, %v5401_v15  ;;  %v5425_v58 = vpop.permute.xlu1 %2868 }
 0x3ba   :  { %v3368_v16 = vmul.f32 %v3251_v13, %v3144_v30  ;;  %v3794_v46 = vadd.f32 %v3793_v14, %v3792_v6  ;;  %v3046_v3 = vmul.bf16 %v3030_v31, %v5401_v15  ;;  %v3369_v61 = vmul.f32 %v3256_v32, %v3145_v22 }
 0x3bb   :  { %v2769_v32 = vrot.slane %v5321_v11, %v4578_v29  ;;  %v2781_v6 = vrot.slane %v5328_v37, %v4578_v29 }
 0x3bc   :  { %v3399_v44 = vadd.f32 %v3398_v48, %v3368_v16  ;;  %v2455_v17 = vpack.c.bf16 %v3794_v46, %v3791_v18  ;;  %v4060_v40 = vpop.eup %4059  ;;  %v3062_v27 = vadd.bf16 1065369472, %v3046_v3  ;;  %v3271_v3 = vpop.permute.xlu0 %3270 }
 0x3bd   :  { %v3108_v59 = vadd.bf16 1065369472, %v4060_v40  ;;  %v3276_v40 = vpop.permute.xlu1 %3275 }
 0x3be   :  { %v3400_v51 = vadd.f32 %v3399_v44, %v3369_v61  ;;  %v5413_v0 = vadd.bf16 %v3582_v33, %v2455_v17  ;;  %v3795_v20 = vpop.f32.mrb[56].mxu0  ;;  %v3078_v57 = vmul.bf16 %v3062_v27, %v3014_v39  ;;  %v3584_v17 = vcombine.low %v2769_v32, %v2781_v6 }
 0x3bf   :  { %v3796_v5 = vpop.f32.mrb[57].mxu0  ;;  %v3124_v53 = vmul.bf16 %v3108_v59, %v2996_v60 }
 0x3c0   :  { %v3031_v4 = vmul.bf16 1027030327, %v5413_v0  ;;  %4063 = vtanh.bf16 %v3078_v57  ;;  %v3797_v34 = vadd.f32 %v3796_v5, %v3795_v20  ;;  %v3798_v56 = vpop.f32.mrb[58].mxu0  ;;  %v3015_v25 = vmul.bf16 1061961548, %v5413_v0 }
 0x3c1   :  { %v3146_v21 = vunpack.c.l.bf16 %v3124_v53  ;;  %v3147_v50 = vunpack.c.h.bf16 %v3124_v53  ;;  %v3799_v1 = vpop.f32.mrb[59].mxu0 }
 0x3c2   :  { %v3047_v13 = vmul.bf16 %v3031_v4, %v5413_v0  ;;  %v3800_v23 = vadd.f32 %v3799_v1, %v3798_v56  ;;  %v2805_v56 = vrot.slane %v5336_v26, %v4578_v29  ;;  %v3281_v1 = vpop.permute.xlu0 %3280 }
 0x3c3   :  { %v4062_v7 = vpop.eup %4061  ;;  %v3370_v55 = vmul.f32 %v3261_v49, %v3146_v21  ;;  %v3371_v63 = vmul.f32 %v3266_v38, %v3147_v50 }
 0x3c4   :  { %v3063_v52 = vadd.bf16 1065369472, %v3047_v13  ;;  %v3109_v43 = vadd.bf16 1065369472, %v4062_v7  ;;  %v2456_v45 = vpack.c.bf16 %v3800_v23, %v3797_v34  ;;  %v3585_v26 = vcombine.low %v2793_v8, %v2805_v56 }
 0x3c5   :  { %v3401_v54 = vadd.f32 %v3400_v51, %v3370_v55  ;;  %v2998_v51 = vmul.bf16 1056980736, %v5401_v15  ;;  %v2853_v56 = vrot.slane %v5408_v62, %v4578_v29 }
 0x3c6   :  { %v3079_v28 = vmul.bf16 %v3063_v52, %v3015_v25  ;;  %v3801_v10 = vpop.f32.mrb[60].mxu0  ;;  %v3125_v48 = vmul.bf16 %v3109_v43, %v2997_v35  ;;  %v5429_v30 = vadd.bf16 %v3583_v19, %v2456_v45  ;;  %v2999_v52 = vmul.bf16 1056980736, %v5413_v0  ;;  %v3286_v19 = vpop.permute.xlu1 %3285 }
 0x3c7   :  { %v3802_v22 = vpop.f32.mrb[61].mxu0  ;;  %v3402_v31 = vadd.f32 %v3401_v54, %v3371_v63 }
 0x3c8   :  { %4065 = vtanh.bf16 %v3079_v28  ;;  %v3803_v12 = vadd.f32 %v3802_v22, %v3801_v10  ;;  %v3804_v18 = vpop.f32.mrb[62].mxu0  ;;  %v3148_v14 = vunpack.c.l.bf16 %v3125_v48  ;;  %v3149_v16 = vunpack.c.h.bf16 %v3125_v48 }
 0x3c9   :  { %v3805_v46 = vpop.f32.mrb[63].mxu0  ;;  %v3032_v33 = vmul.bf16 1027030327, %v5429_v30  ;;  %v3016_v59 = vmul.bf16 1061961548, %v5429_v30 }
 0x3ca   :  { %v3806_v61 = vadd.f32 %v3805_v46, %v3804_v18  ;;  %v3372_v44 = vmul.f32 %v3271_v3, %v3148_v14  ;;  %v3373_v49 = vmul.f32 %v3276_v40, %v3149_v16  ;;  %v2817_v16 = vrot.slane %v5343_v2, %v4578_v29  ;;  %v3291_v3 = vpop.permute.xlu0 %3290 }
 0x3cb   :  { %v4064_v11 = vpop.eup %4063  ;;  %v3048_v39 = vmul.bf16 %v3032_v33, %v5429_v30  ;;  %v2829_v46 = vrot.slane %v5347_v41, %v4578_v29  ;;  %v3000_v41 = vmul.bf16 1056980736, %v5429_v30  ;;  %v2841_v30 = vrot.slane %v5355_v42, %v4578_v29 }
 0x3cc   :  { %v2457_v27 = vpack.c.bf16 %v3806_v61, %v3803_v12  ;;  %v3403_v37 = vadd.f32 %v3402_v31, %v3372_v44  ;;  %v3110_v60 = vadd.bf16 1065369472, %v4064_v11  ;;  %v3296_v11 = vpop.permute.xlu1 %3295  ;;  %v2865_v42 = vrot.slane %v5421_v47, %v4578_v29 }
 0x3cd   :  { %v3064_v20 = vadd.bf16 1065369472, %v3048_v39 }
 0x3ce   :  { %v5437_v57 = vadd.bf16 %v3584_v17, %v2457_v27  ;;  %v3807_v5 = vpop.f32.mrb[64].mxu0  ;;  %v3404_v38 = vadd.f32 %v3403_v37, %v3373_v49  ;;  %v3126_v53 = vmul.bf16 %v3110_v60, %v2998_v51  ;;  %v3586_v37 = vcombine.low %v2817_v16, %v2829_v46 }
 0x3cf   :  { %v3808_v4 = vpop.f32.mrb[65].mxu0  ;;  %v3080_v9 = vmul.bf16 %v3064_v20, %v3016_v59 }
 0x3d0   :  { %v3033_v34 = vmul.bf16 1027030327, %v5437_v57  ;;  %v3150_v15 = vunpack.c.l.bf16 %v3126_v53  ;;  %v3151_v21 = vunpack.c.h.bf16 %v3126_v53  ;;  %v3809_v50 = vadd.f32 %v3808_v4, %v3807_v5  ;;  %v3810_v13 = vpop.f32.mrb[66].mxu0  ;;  %v3306_v62 = vpop.permute.xlu1 %3305 }
 0x3d1   :  { %4067 = vtanh.bf16 %v3080_v9  ;;  %v3811_v7 = vpop.f32.mrb[67].mxu0  ;;  %v3017_v43 = vmul.bf16 1061961548, %v5437_v57 }
 0x3d2   :  { %v3049_v23 = vmul.bf16 %v3033_v34, %v5437_v57  ;;  %v3374_v25 = vmul.f32 %v3281_v1, %v3150_v15  ;;  %v3812_v36 = vadd.f32 %v3811_v7, %v3810_v13  ;;  %v3375_v63 = vmul.f32 %v3286_v19, %v3151_v21 }
 0x3d3   :  { %v4066_v55 = vpop.eup %4065  ;;  %v3587_v19 = vcombine.low %v2841_v30, %v2853_v56 }
 0x3d4   :  { %v3111_v35 = vadd.bf16 1065369472, %v4066_v55  ;;  %v3065_v45 = vadd.bf16 1065369472, %v3049_v23  ;;  %v3405_v54 = vadd.f32 %v3404_v38, %v3374_v25  ;;  %v2458_v28 = vpack.c.bf16 %v3812_v36, %v3809_v50  ;;  %v3301_v23 = vpop.permute.xlu0 %3300 }
 0x3d6   :  { %v3127_v10 = vmul.bf16 %v3111_v35, %v2999_v52  ;;  %v3081_v32 = vmul.bf16 %v3065_v45, %v3017_v43  ;;  %v3813_v48 = vpop.f32.mrb[68].mxu0  ;;  %v3406_v22 = vadd.f32 %v3405_v54, %v3375_v63  ;;  %v5447_v6 = vadd.bf16 %v3585_v26, %v2458_v28 }
 0x3d7   :  { %v3814_v31 = vpop.f32.mrb[69].mxu0  ;;  %v3001_v52 = vmul.bf16 1056980736, %v5437_v57 }
 0x3d8   :  { %v3152_v12 = vunpack.c.l.bf16 %v3127_v10  ;;  %v3153_v18 = vunpack.c.h.bf16 %v3127_v10  ;;  %4069 = vtanh.bf16 %v3081_v32  ;;  %v3815_v0 = vadd.f32 %v3814_v31, %v3813_v48  ;;  %v3816_v14 = vpop.f32.mrb[70].mxu0 }
 0x3d9   :  { %v3034_v33 = vmul.bf16 1027030327, %v5447_v6  ;;  %v3817_v44 = vpop.f32.mrb[71].mxu0  ;;  %v3018_v51 = vmul.bf16 1061961548, %v5447_v6  ;;  %v2877_v10 = vrot.slane %v5425_v58, %v4578_v29 }
 0x3da   :  { %v3376_v61 = vmul.f32 %v3291_v3, %v3152_v12  ;;  %v3818_v40 = vadd.f32 %v3817_v44, %v3816_v14  ;;  %v3377_v39 = vmul.f32 %v3296_v11, %v3153_v18  ;;  %v3311_v14 = vpop.permute.xlu0 %3310  ;;  %v3002_v58 = vmul.bf16 1056980736, %v5447_v6 }
 0x3db   :  { %v3050_v17 = vmul.bf16 %v3034_v33, %v5447_v6  ;;  %v3316_v33 = vpop.permute.xlu1 %3315  ;;  %v3588_v11 = vcombine.low %v2865_v42, %v2877_v10 }
 0x3dc   :  { %v3407_v27 = vadd.f32 %v3406_v22, %v3376_v61  ;;  %v4068_v49 = vpop.eup %4067  ;;  %v2459_v2 = vpack.c.bf16 %v3818_v40, %v3815_v0 }
 0x3dd   :  { %v3066_v60 = vadd.bf16 1065369472, %v3050_v17  ;;  %v3112_v20 = vadd.bf16 1065369472, %v4068_v49 }
 0x3de   :  { %v3408_v59 = vadd.f32 %v3407_v27, %v3377_v39  ;;  %v3819_v5 = vpop.f32.mrb[72].mxu0  ;;  %v5457_v53 = vadd.bf16 %v3586_v37, %v2459_v2 }
 0x3df   :  { %v3082_v38 = vmul.bf16 %v3066_v60, %v3018_v51  ;;  %v3820_v4 = vpop.f32.mrb[73].mxu0  ;;  %v3128_v8 = vmul.bf16 %v3112_v20, %v3000_v41  ;;  %v3321_v20 = vpop.permute.xlu0 %3320 }
 0x3e0   :  { %v3821_v9 = vadd.f32 %v3820_v4, %v3819_v5  ;;  %v3822_v34 = vpop.f32.mrb[74].mxu0  ;;  %v3035_v15 = vmul.bf16 1027030327, %v5457_v53  ;;  %v3019_v35 = vmul.bf16 1061961548, %v5457_v53 }
 0x3e1   :  { %4071 = vtanh.bf16 %v3082_v38  ;;  %v3154_v21 = vunpack.c.l.bf16 %v3128_v8  ;;  %v3155_v50 = vunpack.c.h.bf16 %v3128_v8  ;;  %v3823_v13 = vpop.f32.mrb[75].mxu0  ;;  %v3326_v8 = vpop.permute.xlu1 %3325  ;;  %v3003_v6 = vmul.bf16 1056980736, %v5457_v53 }
 0x3e2   :  { %v3051_v7 = vmul.bf16 %v3035_v15, %v5457_v53  ;;  %v3824_v55 = vadd.f32 %v3823_v13, %v3822_v34 }
 0x3e3   :  { %v4070_v1 = vpop.eup %4069  ;;  %v3378_v25 = vmul.f32 %v3301_v23, %v3154_v21  ;;  %v3379_v26 = vmul.f32 %v3306_v62, %v3155_v50 }
 0x3e4   :  { %v3113_v36 = vadd.bf16 1065369472, %v4070_v1  ;;  %v3067_v43 = vadd.bf16 1065369472, %v3051_v7  ;;  %v2460_v45 = vpack.c.bf16 %v3824_v55, %v3821_v9  ;;  %v3331_v55 = vpop.permute.xlu0 %3330 }
 0x3e5   :  { %v3409_v63 = vadd.f32 %v3408_v59, %v3378_v25 }
 0x3e6   :  { %v3129_v54 = vmul.bf16 %v3113_v36, %v3001_v52  ;;  %v3825_v28 = vpop.f32.mrb[76].mxu0  ;;  %v3083_v32 = vmul.bf16 %v3067_v43, %v3019_v35  ;;  %v2988_v48 = vadd.bf16 %v3587_v19, %v2460_v45  ;;  %v3336_v36 = vpop.permute.xlu1 %3335 }
 0x3e7   :  { %v3826_v57 = vpop.f32.mrb[77].mxu0  ;;  %v3410_v22 = vadd.f32 %v3409_v63, %v3379_v26 }
 0x3e8   :  { %v3156_v31 = vunpack.c.l.bf16 %v3129_v54  ;;  %v3157_v12 = vunpack.c.h.bf16 %v3129_v54  ;;  %v3827_v18 = vadd.f32 %v3826_v57, %v3825_v28  ;;  %v3828_v0 = vpop.f32.mrb[78].mxu0  ;;  %4073 = vtanh.bf16 %v3083_v32  ;;  %v3341_v54 = vpop.permute.xlu0 %3340 }
 0x3e9   :  { %v3036_v16 = vmul.bf16 1027030327, %v2988_v48  ;;  %v3829_v3 = vpop.f32.mrb[79].mxu0  ;;  %v3020_v39 = vmul.bf16 1061961548, %v2988_v48 }
 0x3ea   :  { %v3380_v46 = vmul.f32 %v3311_v14, %v3156_v31  ;;  %v3830_v44 = vadd.f32 %v3829_v3, %v3828_v0  ;;  %v3381_v17 = vmul.f32 %v3316_v33, %v3157_v12  ;;  %v3004_v35 = vmul.bf16 1056980736, %v2988_v48  ;;  %v3346_v42 = vpop.permute.xlu1 %3345 }
 0x3eb   :  { %v3052_v61 = vmul.bf16 %v3036_v16, %v2988_v48 }
 0x3ec   :  { %v4072_v47 = vpop.eup %4071  ;;  %v3411_v29 = vadd.f32 %v3410_v22, %v3380_v46  ;;  %v2461_v49 = vpack.c.bf16 %v3830_v44, %v3827_v18  ;;  %v3351_v16 = vpop.permute.xlu0 %3350 }
 0x3ed   :  { %v3114_v40 = vadd.bf16 1065369472, %v4072_v47  ;;  %v3068_v27 = vadd.bf16 1065369472, %v3052_v61 }
 0x3ee   :  { %v3412_v37 = vadd.f32 %v3411_v29, %v3381_v17  ;;  %v2989_v2 = vadd.bf16 %v3588_v11, %v2461_v49  ;;  %v3356_v48 = vpop.permute.xlu1 %3355  ;;  %v3435_v17 = vsub.s32 0, %v4565_v24 }
 0x3ef   :  { %v3130_v51 = vmul.bf16 %v3114_v40, %v3002_v58  ;;  %v3084_v60 = vmul.bf16 %v3068_v27, %v3020_v39 }
 0x3f0   :  { %v3037_v5 = vmul.bf16 1027030327, %v2989_v2  ;;  %v3021_v21 = vmul.bf16 1061961548, %v2989_v2  ;;  %v3005_v22 = vmul.bf16 1056980736, %v2989_v2  ;;  %v3431_v58 = vpop.permute.xlu0 %3430 }
 0x3f1   :  { %v3158_v59 = vunpack.c.l.bf16 %v3130_v51  ;;  %v3159_v41 = vunpack.c.h.bf16 %v3130_v51  ;;  %4075 = vtanh.bf16 %v3084_v60  ;;  %v3436_v39 = vrot.slane %v3431_v58, %v3435_v17 }
 0x3f2   :  { %v3053_v9 = vmul.bf16 %v3037_v5, %v2989_v2 }
 0x3f3   :  { %v3382_v38 = vmul.f32 %v3321_v20, %v3158_v59  ;;  %v4074_v4 = vpop.eup %4073  ;;  %v3383_v34 = vmul.f32 %v3326_v8, %v3159_v41 }
 0x3f4   :  { %v3115_v15 = vadd.bf16 1065369472, %v4074_v4  ;;  %v3069_v50 = vadd.bf16 1065369472, %v3053_v9 }
 0x3f5   :  { %v3413_v56 = vadd.f32 %v3412_v37, %v3382_v38 }
 0x3f6   :  { %v3131_v1 = vmul.bf16 %v3115_v15, %v3003_v6  ;;  %v3085_v30 = vmul.bf16 %v3069_v50, %v3021_v21 }
 0x3f7   :  { %v3414_v13 = vadd.f32 %v3413_v56, %v3383_v34 }
 0x3f8   :  { %v3160_v23 = vunpack.c.l.bf16 %v3131_v1  ;;  %v3161_v7 = vunpack.c.h.bf16 %v3131_v1  ;;  %4077 = vtanh.bf16 %v3085_v30 }
 0x3fa   :  { %v3384_v25 = vmul.f32 %v3331_v55, %v3160_v23  ;;  %v3385_v19 = vmul.f32 %v3336_v36, %v3161_v7 }
 0x3fc   :  { %v4076_v52 = vpop.eup %4075  ;;  %v3415_v62 = vadd.f32 %v3414_v13, %v3384_v25 }
 0x3fd   :  { %v3116_v43 = vadd.bf16 1065369472, %v4076_v52 }
 0x3fe   :  { %v3416_v45 = vadd.f32 %v3415_v62, %v3385_v19 }
 0x3ff   :  { %v3132_v26 = vmul.bf16 %v3116_v43, %v3004_v35 }
 0x401   :  { %v3162_v53 = vunpack.c.l.bf16 %v3132_v26  ;;  %v3163_v63 = vunpack.c.h.bf16 %v3132_v26 }
 0x403   :  { %v3386_v28 = vmul.f32 %v3341_v54, %v3162_v53  ;;  %v4078_v10 = vpop.eup %4077  ;;  %v3387_v32 = vmul.f32 %v3346_v42, %v3163_v63 }
 0x404   :  { %v3117_v31 = vadd.bf16 1065369472, %v4078_v10 }
 0x405   :  { %v3417_v57 = vadd.f32 %v3416_v45, %v3386_v28 }
 0x406   :  { %v3133_v18 = vmul.bf16 %v3117_v31, %v3005_v22 }
 0x407   :  { %v3418_v12 = vadd.f32 %v3417_v57, %v3387_v32 }
 0x408   :  { %v3164_v0 = vunpack.c.l.bf16 %v3133_v18  ;;  %v3165_v14 = vunpack.c.h.bf16 %v3133_v18 }
 0x40a   :  { %v3388_v46 = vmul.f32 %v3351_v16, %v3164_v0  ;;  %v3389_v3 = vmul.f32 %v3356_v48, %v3165_v14 }
 0x40c   :  { %v3419_v33 = vadd.f32 %v3418_v12, %v3388_v46 }
 0x40e   :  { %v3420_v61 = vadd.f32 %v3419_v33, %v3389_v3 }
 0x410   :  { %v3421_v44 = vrot.slane %v3420_v61, 4 }
 0x412   :  { %v3422_v47 = vadd.f32 %v3421_v44, %v3420_v61 }
 0x414   :  { %v3423_v11 = vrot.slane %v3422_v47, 2 }
 0x416   :  { %v3424_v29 = vadd.f32 %v3423_v11, %v3422_v47 }
 0x418   :  { %v3425_v40 = vrot.slane %v3424_v29, 1 }
 0x41a   :  { %v3426_v27 = vadd.f32 %v3425_v40, %v3424_v29 }
 0x41c   :  { %v3437_v49 = vadd.f32 %v3436_v39, %v3426_v27 }
 0x41e   :  { %v3589_v37 = vclamps-f32 %v3437_v49, 2.0 }
 0x420   :  { %3440 = vst [vmem:[%s5486_s9] sm:$0x1] %v3589_v37 }

</bundles_post_ra>
